<compile_context>
chip_gen: v7x
topology: tpu7x:2x2x1
jax: 0.10.0
libtpu: 0.0.40
codegen_flags: <defaults>
</compile_context>

<pallas_src>
import jax
import jax.numpy as jnp
from jax.experimental import pallas as pl
from jax.experimental.pallas import tpu as pltpu


def _gate_perm(H):
    # PyTorch LSTM gate order along the 4H axis is (i, f, g, o); reorder to
    # (i, f, o, g) so the kernel applies sigmoid to one contiguous 3H slab and
    # tanh to the trailing H slab.
    return jnp.concatenate([
        jnp.arange(0, H), jnp.arange(H, 2 * H),
        jnp.arange(3 * H, 4 * H), jnp.arange(2 * H, 3 * H)])


def seq2seq_kernel(x_ref,
                   wih_e_ref, whh_e_ref, b_e_ref,
                   whh_d_ref, b_d_ref,
                   whh_deff_ref, b_deff_ref,
                   wlin_row_ref, blin_ref,
                   out_ref):
    seq_len, batch, _ = x_ref.shape
    target_len = out_ref.shape[1]
    H = whh_e_ref.shape[0]
    H3 = 3 * H

    # Hoist weights and bias broadcasts out of the loops (broadcasts are not
    # CSE'd by JAX, so do them exactly once here).
    wih_e = wih_e_ref[...]                                    # (1, 4H)
    whh_e = whh_e_ref[...]                                    # (H, 4H)
    b_e = jnp.broadcast_to(b_e_ref[...], (batch, 4 * H))
    whh_d = whh_d_ref[...]                                    # (H, 4H)
    b_d = jnp.broadcast_to(b_d_ref[...], (batch, 4 * H))
    whh_deff = whh_deff_ref[...]                              # (H, 4H)
    b_deff = jnp.broadcast_to(b_deff_ref[...], (batch, 4 * H))
    wlin_row = wlin_row_ref[...]                              # (1, H)
    blin = jnp.broadcast_to(blin_ref[...], (batch, 1))        # (batch, 1)

    def split_gates(gates):
        # gate order (i, f, o | g): exactly two EUP activation dispatches.
        sg = jax.nn.sigmoid(gates[:, :H3])
        g = jnp.tanh(gates[:, H3:])
        return sg[:, :H], sg[:, H:2 * H], sg[:, 2 * H:H3], g

    def cell(gates, c):
        i, f, o, g = split_gates(gates)
        c_new = f * c + i * g
        h_new = o * jnp.tanh(c_new)
        return h_new, c_new

    # ---------------- encoder (fully unrolled) -------------------------------
    # K=1 input matmul replaced by a VPU broadcast multiply; all input-side
    # contributions are independent of the recurrence -> off the critical path.
    xg = [x_ref[t] * wih_e + b_e for t in range(seq_len)]     # (batch, 4H) each

    # Step 0: h = c = 0 -> no h@whh_e matmul, no f*c term.
    i0, _, o0, g0 = split_gates(xg[0])
    c = i0 * g0
    h = o0 * jnp.tanh(c)

    for t in range(1, seq_len):
        gates = xg[t] + jnp.dot(h, whh_e, preferred_element_type=jnp.float32)
        h, c = cell(gates, c)

    # ---------------- decoder (fully unrolled, no teacher forcing) -----------
    # Linear head + input matmul folded into whh_deff / b_deff -> one MXU push
    # per step on the serial critical path.
    hs = []
    # step 0: decoder_input is exactly zero -> no input-weight contribution.
    gates = jnp.dot(h, whh_d, preferred_element_type=jnp.float32) + b_d
    h, c = cell(gates, c)
    hs.append(h)
    for _ in range(1, target_len):
        gates = jnp.dot(h, whh_deff, preferred_element_type=jnp.float32) + b_deff
        h, c = cell(gates, c)
        hs.append(h)

    # Predictions are off the recurrence critical path: VPU multiply + lane
    # reduce per step, then a single store of shape (batch, target_len).
    preds = [jnp.sum(h_t * wlin_row, axis=-1, keepdims=True) + blin for h_t in hs]
    out_ref[...] = jnp.concatenate(preds, axis=1)


def lstm_seq2seq_forward(x, params, target_len):
    seq_len, batch, _ = x.shape
    vmem = pl.BlockSpec(memory_space=pltpu.MemorySpace.VMEM)
    out_bt = pl.pallas_call(
        seq2seq_kernel,
        out_shape=jax.ShapeDtypeStruct((batch, target_len), jnp.float32),
        in_specs=[vmem] * 10,
        out_specs=vmem,
    )(x,
      params["wih_e_t"], params["whh_e_t"], params["b_e"],
      params["whh_d_t"], params["b_d"],
      params["whh_d_eff"], params["b_d_eff"],
      params["wlin_row"], params["blin"])
    # Match torch module layout: (target_len, batch, 1)
    return out_bt.T[:, :, None]


def init_params(key, input_size, hidden_size):
    """Deterministic init in PyTorch layout: LSTM weights (4H, in), (4H, H)."""
    H = hidden_size
    k = 1.0 / float(H) ** 0.5
    keys = jax.random.split(key, 10)

    def u(kk, shape):
        return jax.random.uniform(kk, shape, jnp.float32, -k, k)

    return {
        "wih_e": u(keys[0], (4 * H, input_size)),
        "whh_e": u(keys[1], (4 * H, H)),
        "bih_e": u(keys[2], (4 * H,)),
        "bhh_e": u(keys[3], (4 * H,)),
        "wih_d": u(keys[4], (4 * H, 1)),
        "whh_d": u(keys[5], (4 * H, H)),
        "bih_d": u(keys[6], (4 * H,)),
        "bhh_d": u(keys[7], (4 * H,)),
        "wlin": u(keys[8], (1, H)),
        "blin": u(keys[9], (1,)),
    }


def prep_kernel_params(raw):
    """Host-side weight prep: transpose, gate reorder (i,f,o,g), head folding."""
    H = raw["whh_e"].shape[1]
    perm = _gate_perm(H)

    wih_e_t = raw["wih_e"].T[:, perm]                  # (input_size, 4H)
    whh_e_t = raw["whh_e"].T[:, perm]                  # (H, 4H)
    b_e = (raw["bih_e"] + raw["bhh_e"])[perm][None, :]

    wih_d_t = raw["wih_d"].T[:, perm]                  # (1, 4H)
    whh_d_t = raw["whh_d"].T[:, perm]                  # (H, 4H)
    b_d = (raw["bih_d"] + raw["bhh_d"])[perm][None, :]

    wlin_t = raw["wlin"].T                             # (H, 1)
    blin = raw["blin"][None, :]                        # (1, 1)

    # Fold the linear head + decoder input matmul into the recurrence:
    #   y_t   = h_t @ wlin_t + blin
    #   gates = y_t @ wih_d_t + h_t @ whh_d_t + b_d
    #         = h_t @ (wlin_t @ wih_d_t + whh_d_t) + (blin @ wih_d_t + b_d)
    whh_d_eff = whh_d_t + wlin_t @ wih_d_t             # (H, 4H)
    b_d_eff = b_d + blin @ wih_d_t                     # (1, 4H)

    return {
        "wih_e_t": wih_e_t, "whh_e_t": whh_e_t, "b_e": b_e,
        "whh_d_t": whh_d_t, "b_d": b_d,
        "whh_d_eff": whh_d_eff, "b_d_eff": b_d_eff,
        "wlin_row": raw["wlin"],                       # (1, H)
        "blin": blin,                                  # (1, 1)
    }


def reference_forward(x, raw, target_len):
    """Pure-JAX reference of the original (unfused, PyTorch gate-order) math."""
    H = raw["whh_e"].shape[1]

    def cell(x_t, h, c, wih, whh, bih, bhh):
        gates = x_t @ wih.T + h @ whh.T + bih + bhh
        i = jax.nn.sigmoid(gates[:, :H])
        f = jax.nn.sigmoid(gates[:, H:2 * H])
        g = jnp.tanh(gates[:, 2 * H:3 * H])
        o = jax.nn.sigmoid(gates[:, 3 * H:])
        c = f * c + i * g
        return o * jnp.tanh(c), c

    seq_len, batch, _ = x.shape
    h = jnp.zeros((batch, H), jnp.float32)
    c = jnp.zeros((batch, H), jnp.float32)
    for t in range(seq_len):
        h, c = cell(x[t], h, c, raw["wih_e"], raw["whh_e"],
                    raw["bih_e"], raw["bhh_e"])

    y = jnp.zeros((batch, 1), jnp.float32)
    outs = []
    for _ in range(target_len):
        h, c = cell(y, h, c, raw["wih_d"], raw["whh_d"],
                    raw["bih_d"], raw["bhh_d"])
        y = h @ raw["wlin"].T + raw["blin"][None, :]
        outs.append(y)
    return jnp.stack(outs, axis=0)


if __name__ == "__main__":
    # Small shapes consistent with the module (input_size=1, seq-major LSTM).
    batch, seq_len, input_size, hidden_size, target_len = 2, 8, 1, 32, 8

    key = jax.random.PRNGKey(0)
    kx, kp = jax.random.split(key)
    x = jax.random.normal(kx, (seq_len, batch, input_size), jnp.float32)
    raw = init_params(kp, input_size, hidden_size)
    kparams = prep_kernel_params(raw)

    out = lstm_seq2seq_forward(x, kparams, target_len)
    out = jax.block_until_ready(out)
    assert out.shape == (target_len, batch, 1)

    ref = reference_forward(x, raw, target_len)
    if not jnp.allclose(out, ref, atol=2e-4, rtol=2e-4):
        raise AssertionError("Pallas kernel output mismatches JAX reference")

    print("KERNEL_OK")
</pallas_src>

<mosaic_0001>
module attributes {stable_mosaic.version = 11 : i64} {
  func.func @seq2seq_kernel(%arg0: memref<8x2x1xf32, #tpu.memory_space<vmem>>, %arg1: memref<1x128xf32, #tpu.memory_space<vmem>>, %arg2: memref<32x128xf32, #tpu.memory_space<vmem>>, %arg3: memref<1x128xf32, #tpu.memory_space<vmem>>, %arg4: memref<32x128xf32, #tpu.memory_space<vmem>>, %arg5: memref<1x128xf32, #tpu.memory_space<vmem>>, %arg6: memref<32x128xf32, #tpu.memory_space<vmem>>, %arg7: memref<1x128xf32, #tpu.memory_space<vmem>>, %arg8: memref<1x32xf32, #tpu.memory_space<vmem>>, %arg9: memref<1x1xf32, #tpu.memory_space<vmem>>, %arg10: memref<2x8xf32, #tpu.memory_space<vmem>>) attributes {dimension_semantics = [], scalar_prefetch = 0 : i64, scratch_operands = 0 : i64, tpu.core_type = #tpu.core_type<tc>} {
    %c0 = arith.constant 0 : index
    %c0_0 = arith.constant 0 : index
    %0 = vector.load %arg1[%c0, %c0_0] : memref<1x128xf32, #tpu.memory_space<vmem>>, vector<1x128xf32>
    %c0_1 = arith.constant 0 : index
    %c0_2 = arith.constant 0 : index
    %1 = vector.load %arg2[%c0_1, %c0_2] : memref<32x128xf32, #tpu.memory_space<vmem>>, vector<32x128xf32>
    %c0_3 = arith.constant 0 : index
    %c0_4 = arith.constant 0 : index
    %2 = vector.load %arg3[%c0_3, %c0_4] : memref<1x128xf32, #tpu.memory_space<vmem>>, vector<1x128xf32>
    %3 = vector.shape_cast %2 : vector<1x128xf32> to vector<1x128xf32>
    %4 = vector.broadcast %3 : vector<1x128xf32> to vector<2x128xf32>
    %c0_5 = arith.constant 0 : index
    %c0_6 = arith.constant 0 : index
    %5 = vector.load %arg4[%c0_5, %c0_6] : memref<32x128xf32, #tpu.memory_space<vmem>>, vector<32x128xf32>
    %c0_7 = arith.constant 0 : index
    %c0_8 = arith.constant 0 : index
    %6 = vector.load %arg5[%c0_7, %c0_8] : memref<1x128xf32, #tpu.memory_space<vmem>>, vector<1x128xf32>
    %7 = vector.shape_cast %6 : vector<1x128xf32> to vector<1x128xf32>
    %8 = vector.broadcast %7 : vector<1x128xf32> to vector<2x128xf32>
    %c0_9 = arith.constant 0 : index
    %c0_10 = arith.constant 0 : index
    %9 = vector.load %arg6[%c0_9, %c0_10] : memref<32x128xf32, #tpu.memory_space<vmem>>, vector<32x128xf32>
    %c0_11 = arith.constant 0 : index
    %c0_12 = arith.constant 0 : index
    %10 = vector.load %arg7[%c0_11, %c0_12] : memref<1x128xf32, #tpu.memory_space<vmem>>, vector<1x128xf32>
    %11 = vector.shape_cast %10 : vector<1x128xf32> to vector<1x128xf32>
    %12 = vector.broadcast %11 : vector<1x128xf32> to vector<2x128xf32>
    %c0_13 = arith.constant 0 : index
    %c0_14 = arith.constant 0 : index
    %13 = vector.load %arg8[%c0_13, %c0_14] : memref<1x32xf32, #tpu.memory_space<vmem>>, vector<1x32xf32>
    %c0_15 = arith.constant 0 : index
    %c0_16 = arith.constant 0 : index
    %14 = vector.load %arg9[%c0_15, %c0_16] : memref<1x1xf32, #tpu.memory_space<vmem>>, vector<1x1xf32>
    %15 = vector.shape_cast %14 : vector<1x1xf32> to vector<1x1xf32>
    %16 = vector.broadcast %15 : vector<1x1xf32> to vector<2x1xf32>
    %c0_17 = arith.constant 0 : index
    %c0_18 = arith.constant 0 : index
    %c0_19 = arith.constant 0 : index
    %17 = vector.load %arg0[%c0_17, %c0_18, %c0_19] : memref<8x2x1xf32, #tpu.memory_space<vmem>>, vector<1x2x1xf32>
    %18 = vector.shape_cast %17 : vector<1x2x1xf32> to vector<2x1xf32>
    %19 = vector.broadcast %18 : vector<2x1xf32> to vector<2x128xf32>
    %20 = vector.broadcast %0 : vector<1x128xf32> to vector<2x128xf32>
    %21 = arith.mulf %19, %20 : vector<2x128xf32>
    %22 = arith.addf %21, %4 : vector<2x128xf32>
    %c1 = arith.constant 1 : index
    %c0_20 = arith.constant 0 : index
    %c0_21 = arith.constant 0 : index
    %23 = vector.load %arg0[%c1, %c0_20, %c0_21] : memref<8x2x1xf32, #tpu.memory_space<vmem>>, vector<1x2x1xf32>
    %24 = vector.shape_cast %23 : vector<1x2x1xf32> to vector<2x1xf32>
    %25 = vector.broadcast %24 : vector<2x1xf32> to vector<2x128xf32>
    %26 = vector.broadcast %0 : vector<1x128xf32> to vector<2x128xf32>
    %27 = arith.mulf %25, %26 : vector<2x128xf32>
    %28 = arith.addf %27, %4 : vector<2x128xf32>
    %c2 = arith.constant 2 : index
    %c0_22 = arith.constant 0 : index
    %c0_23 = arith.constant 0 : index
    %29 = vector.load %arg0[%c2, %c0_22, %c0_23] : memref<8x2x1xf32, #tpu.memory_space<vmem>>, vector<1x2x1xf32>
    %30 = vector.shape_cast %29 : vector<1x2x1xf32> to vector<2x1xf32>
    %31 = vector.broadcast %30 : vector<2x1xf32> to vector<2x128xf32>
    %32 = vector.broadcast %0 : vector<1x128xf32> to vector<2x128xf32>
    %33 = arith.mulf %31, %32 : vector<2x128xf32>
    %34 = arith.addf %33, %4 : vector<2x128xf32>
    %c3 = arith.constant 3 : index
    %c0_24 = arith.constant 0 : index
    %c0_25 = arith.constant 0 : index
    %35 = vector.load %arg0[%c3, %c0_24, %c0_25] : memref<8x2x1xf32, #tpu.memory_space<vmem>>, vector<1x2x1xf32>
    %36 = vector.shape_cast %35 : vector<1x2x1xf32> to vector<2x1xf32>
    %37 = vector.broadcast %36 : vector<2x1xf32> to vector<2x128xf32>
    %38 = vector.broadcast %0 : vector<1x128xf32> to vector<2x128xf32>
    %39 = arith.mulf %37, %38 : vector<2x128xf32>
    %40 = arith.addf %39, %4 : vector<2x128xf32>
    %c4 = arith.constant 4 : index
    %c0_26 = arith.constant 0 : index
    %c0_27 = arith.constant 0 : index
    %41 = vector.load %arg0[%c4, %c0_26, %c0_27] : memref<8x2x1xf32, #tpu.memory_space<vmem>>, vector<1x2x1xf32>
    %42 = vector.shape_cast %41 : vector<1x2x1xf32> to vector<2x1xf32>
    %43 = vector.broadcast %42 : vector<2x1xf32> to vector<2x128xf32>
    %44 = vector.broadcast %0 : vector<1x128xf32> to vector<2x128xf32>
    %45 = arith.mulf %43, %44 : vector<2x128xf32>
    %46 = arith.addf %45, %4 : vector<2x128xf32>
    %c5 = arith.constant 5 : index
    %c0_28 = arith.constant 0 : index
    %c0_29 = arith.constant 0 : index
    %47 = vector.load %arg0[%c5, %c0_28, %c0_29] : memref<8x2x1xf32, #tpu.memory_space<vmem>>, vector<1x2x1xf32>
    %48 = vector.shape_cast %47 : vector<1x2x1xf32> to vector<2x1xf32>
    %49 = vector.broadcast %48 : vector<2x1xf32> to vector<2x128xf32>
    %50 = vector.broadcast %0 : vector<1x128xf32> to vector<2x128xf32>
    %51 = arith.mulf %49, %50 : vector<2x128xf32>
    %52 = arith.addf %51, %4 : vector<2x128xf32>
    %c6 = arith.constant 6 : index
    %c0_30 = arith.constant 0 : index
    %c0_31 = arith.constant 0 : index
    %53 = vector.load %arg0[%c6, %c0_30, %c0_31] : memref<8x2x1xf32, #tpu.memory_space<vmem>>, vector<1x2x1xf32>
    %54 = vector.shape_cast %53 : vector<1x2x1xf32> to vector<2x1xf32>
    %55 = vector.broadcast %54 : vector<2x1xf32> to vector<2x128xf32>
    %56 = vector.broadcast %0 : vector<1x128xf32> to vector<2x128xf32>
    %57 = arith.mulf %55, %56 : vector<2x128xf32>
    %58 = arith.addf %57, %4 : vector<2x128xf32>
    %c7 = arith.constant 7 : index
    %c0_32 = arith.constant 0 : index
    %c0_33 = arith.constant 0 : index
    %59 = vector.load %arg0[%c7, %c0_32, %c0_33] : memref<8x2x1xf32, #tpu.memory_space<vmem>>, vector<1x2x1xf32>
    %60 = vector.shape_cast %59 : vector<1x2x1xf32> to vector<2x1xf32>
    %61 = vector.broadcast %60 : vector<2x1xf32> to vector<2x128xf32>
    %62 = vector.broadcast %0 : vector<1x128xf32> to vector<2x128xf32>
    %63 = arith.mulf %61, %62 : vector<2x128xf32>
    %64 = arith.addf %63, %4 : vector<2x128xf32>
    %65 = vector.extract_strided_slice %22 {offsets = [0, 0], sizes = [2, 96], strides = [1, 1]} : vector<2x128xf32> to vector<2x96xf32>
    %66 = arith.negf %65 : vector<2x96xf32>
    %67 = math.exp %66 : vector<2x96xf32>
    %cst = arith.constant 1.000000e+00 : f32
    %68 = vector.broadcast %cst : f32 to vector<2x96xf32>
    %69 = arith.addf %68, %67 : vector<2x96xf32>
    %70 = arith.divf %68, %69 : vector<2x96xf32>
    %71 = vector.extract_strided_slice %22 {offsets = [0, 96], sizes = [2, 32], strides = [1, 1]} : vector<2x128xf32> to vector<2x32xf32>
    %72 = math.tanh %71 : vector<2x32xf32>
    %73 = vector.extract_strided_slice %70 {offsets = [0, 0], sizes = [2, 32], strides = [1, 1]} : vector<2x96xf32> to vector<2x32xf32>
    %74 = vector.extract_strided_slice %70 {offsets = [0, 64], sizes = [2, 32], strides = [1, 1]} : vector<2x96xf32> to vector<2x32xf32>
    %75 = arith.mulf %73, %72 : vector<2x32xf32>
    %76 = math.tanh %75 : vector<2x32xf32>
    %77 = arith.mulf %74, %76 : vector<2x32xf32>
    %cst_34 = arith.constant dense<0.000000e+00> : vector<2x128xf32>
    %78 = tpu.matmul %77, %1, %cst_34 {dimension_numbers = #tpu.dot_dimension_numbers<[1], [0], [0], [1], [0, 0, 1, 1], [], []>} : vector<2x32xf32>, vector<32x128xf32>, vector<2x128xf32> -> vector<2x128xf32>
    %79 = arith.addf %28, %78 : vector<2x128xf32>
    %80 = vector.extract_strided_slice %79 {offsets = [0, 0], sizes = [2, 96], strides = [1, 1]} : vector<2x128xf32> to vector<2x96xf32>
    %81 = arith.negf %80 : vector<2x96xf32>
    %82 = math.exp %81 : vector<2x96xf32>
    %cst_35 = arith.constant 1.000000e+00 : f32
    %83 = vector.broadcast %cst_35 : f32 to vector<2x96xf32>
    %84 = arith.addf %83, %82 : vector<2x96xf32>
    %85 = arith.divf %83, %84 : vector<2x96xf32>
    %86 = vector.extract_strided_slice %79 {offsets = [0, 96], sizes = [2, 32], strides = [1, 1]} : vector<2x128xf32> to vector<2x32xf32>
    %87 = math.tanh %86 : vector<2x32xf32>
    %88 = vector.extract_strided_slice %85 {offsets = [0, 0], sizes = [2, 32], strides = [1, 1]} : vector<2x96xf32> to vector<2x32xf32>
    %89 = vector.extract_strided_slice %85 {offsets = [0, 32], sizes = [2, 32], strides = [1, 1]} : vector<2x96xf32> to vector<2x32xf32>
    %90 = vector.extract_strided_slice %85 {offsets = [0, 64], sizes = [2, 32], strides = [1, 1]} : vector<2x96xf32> to vector<2x32xf32>
    %91 = arith.mulf %89, %75 : vector<2x32xf32>
    %92 = arith.mulf %88, %87 : vector<2x32xf32>
    %93 = arith.addf %91, %92 : vector<2x32xf32>
    %94 = math.tanh %93 : vector<2x32xf32>
    %95 = arith.mulf %90, %94 : vector<2x32xf32>
    %cst_36 = arith.constant dense<0.000000e+00> : vector<2x128xf32>
    %96 = tpu.matmul %95, %1, %cst_36 {dimension_numbers = #tpu.dot_dimension_numbers<[1], [0], [0], [1], [0, 0, 1, 1], [], []>} : vector<2x32xf32>, vector<32x128xf32>, vector<2x128xf32> -> vector<2x128xf32>
    %97 = arith.addf %34, %96 : vector<2x128xf32>
    %98 = vector.extract_strided_slice %97 {offsets = [0, 0], sizes = [2, 96], strides = [1, 1]} : vector<2x128xf32> to vector<2x96xf32>
    %99 = arith.negf %98 : vector<2x96xf32>
    %100 = math.exp %99 : vector<2x96xf32>
    %cst_37 = arith.constant 1.000000e+00 : f32
    %101 = vector.broadcast %cst_37 : f32 to vector<2x96xf32>
    %102 = arith.addf %101, %100 : vector<2x96xf32>
    %103 = arith.divf %101, %102 : vector<2x96xf32>
    %104 = vector.extract_strided_slice %97 {offsets = [0, 96], sizes = [2, 32], strides = [1, 1]} : vector<2x128xf32> to vector<2x32xf32>
    %105 = math.tanh %104 : vector<2x32xf32>
    %106 = vector.extract_strided_slice %103 {offsets = [0, 0], sizes = [2, 32], strides = [1, 1]} : vector<2x96xf32> to vector<2x32xf32>
    %107 = vector.extract_strided_slice %103 {offsets = [0, 32], sizes = [2, 32], strides = [1, 1]} : vector<2x96xf32> to vector<2x32xf32>
    %108 = vector.extract_strided_slice %103 {offsets = [0, 64], sizes = [2, 32], strides = [1, 1]} : vector<2x96xf32> to vector<2x32xf32>
    %109 = arith.mulf %107, %93 : vector<2x32xf32>
    %110 = arith.mulf %106, %105 : vector<2x32xf32>
    %111 = arith.addf %109, %110 : vector<2x32xf32>
    %112 = math.tanh %111 : vector<2x32xf32>
    %113 = arith.mulf %108, %112 : vector<2x32xf32>
    %cst_38 = arith.constant dense<0.000000e+00> : vector<2x128xf32>
    %114 = tpu.matmul %113, %1, %cst_38 {dimension_numbers = #tpu.dot_dimension_numbers<[1], [0], [0], [1], [0, 0, 1, 1], [], []>} : vector<2x32xf32>, vector<32x128xf32>, vector<2x128xf32> -> vector<2x128xf32>
    %115 = arith.addf %40, %114 : vector<2x128xf32>
    %116 = vector.extract_strided_slice %115 {offsets = [0, 0], sizes = [2, 96], strides = [1, 1]} : vector<2x128xf32> to vector<2x96xf32>
    %117 = arith.negf %116 : vector<2x96xf32>
    %118 = math.exp %117 : vector<2x96xf32>
    %cst_39 = arith.constant 1.000000e+00 : f32
    %119 = vector.broadcast %cst_39 : f32 to vector<2x96xf32>
    %120 = arith.addf %119, %118 : vector<2x96xf32>
    %121 = arith.divf %119, %120 : vector<2x96xf32>
    %122 = vector.extract_strided_slice %115 {offsets = [0, 96], sizes = [2, 32], strides = [1, 1]} : vector<2x128xf32> to vector<2x32xf32>
    %123 = math.tanh %122 : vector<2x32xf32>
    %124 = vector.extract_strided_slice %121 {offsets = [0, 0], sizes = [2, 32], strides = [1, 1]} : vector<2x96xf32> to vector<2x32xf32>
    %125 = vector.extract_strided_slice %121 {offsets = [0, 32], sizes = [2, 32], strides = [1, 1]} : vector<2x96xf32> to vector<2x32xf32>
    %126 = vector.extract_strided_slice %121 {offsets = [0, 64], sizes = [2, 32], strides = [1, 1]} : vector<2x96xf32> to vector<2x32xf32>
    %127 = arith.mulf %125, %111 : vector<2x32xf32>
    %128 = arith.mulf %124, %123 : vector<2x32xf32>
    %129 = arith.addf %127, %128 : vector<2x32xf32>
    %130 = math.tanh %129 : vector<2x32xf32>
    %131 = arith.mulf %126, %130 : vector<2x32xf32>
    %cst_40 = arith.constant dense<0.000000e+00> : vector<2x128xf32>
    %132 = tpu.matmul %131, %1, %cst_40 {dimension_numbers = #tpu.dot_dimension_numbers<[1], [0], [0], [1], [0, 0, 1, 1], [], []>} : vector<2x32xf32>, vector<32x128xf32>, vector<2x128xf32> -> vector<2x128xf32>
    %133 = arith.addf %46, %132 : vector<2x128xf32>
    %134 = vector.extract_strided_slice %133 {offsets = [0, 0], sizes = [2, 96], strides = [1, 1]} : vector<2x128xf32> to vector<2x96xf32>
    %135 = arith.negf %134 : vector<2x96xf32>
    %136 = math.exp %135 : vector<2x96xf32>
    %cst_41 = arith.constant 1.000000e+00 : f32
    %137 = vector.broadcast %cst_41 : f32 to vector<2x96xf32>
    %138 = arith.addf %137, %136 : vector<2x96xf32>
    %139 = arith.divf %137, %138 : vector<2x96xf32>
    %140 = vector.extract_strided_slice %133 {offsets = [0, 96], sizes = [2, 32], strides = [1, 1]} : vector<2x128xf32> to vector<2x32xf32>
    %141 = math.tanh %140 : vector<2x32xf32>
    %142 = vector.extract_strided_slice %139 {offsets = [0, 0], sizes = [2, 32], strides = [1, 1]} : vector<2x96xf32> to vector<2x32xf32>
    %143 = vector.extract_strided_slice %139 {offsets = [0, 32], sizes = [2, 32], strides = [1, 1]} : vector<2x96xf32> to vector<2x32xf32>
    %144 = vector.extract_strided_slice %139 {offsets = [0, 64], sizes = [2, 32], strides = [1, 1]} : vector<2x96xf32> to vector<2x32xf32>
    %145 = arith.mulf %143, %129 : vector<2x32xf32>
    %146 = arith.mulf %142, %141 : vector<2x32xf32>
    %147 = arith.addf %145, %146 : vector<2x32xf32>
    %148 = math.tanh %147 : vector<2x32xf32>
    %149 = arith.mulf %144, %148 : vector<2x32xf32>
    %cst_42 = arith.constant dense<0.000000e+00> : vector<2x128xf32>
    %150 = tpu.matmul %149, %1, %cst_42 {dimension_numbers = #tpu.dot_dimension_numbers<[1], [0], [0], [1], [0, 0, 1, 1], [], []>} : vector<2x32xf32>, vector<32x128xf32>, vector<2x128xf32> -> vector<2x128xf32>
    %151 = arith.addf %52, %150 : vector<2x128xf32>
    %152 = vector.extract_strided_slice %151 {offsets = [0, 0], sizes = [2, 96], strides = [1, 1]} : vector<2x128xf32> to vector<2x96xf32>
    %153 = arith.negf %152 : vector<2x96xf32>
    %154 = math.exp %153 : vector<2x96xf32>
    %cst_43 = arith.constant 1.000000e+00 : f32
    %155 = vector.broadcast %cst_43 : f32 to vector<2x96xf32>
    %156 = arith.addf %155, %154 : vector<2x96xf32>
    %157 = arith.divf %155, %156 : vector<2x96xf32>
    %158 = vector.extract_strided_slice %151 {offsets = [0, 96], sizes = [2, 32], strides = [1, 1]} : vector<2x128xf32> to vector<2x32xf32>
    %159 = math.tanh %158 : vector<2x32xf32>
    %160 = vector.extract_strided_slice %157 {offsets = [0, 0], sizes = [2, 32], strides = [1, 1]} : vector<2x96xf32> to vector<2x32xf32>
    %161 = vector.extract_strided_slice %157 {offsets = [0, 32], sizes = [2, 32], strides = [1, 1]} : vector<2x96xf32> to vector<2x32xf32>
    %162 = vector.extract_strided_slice %157 {offsets = [0, 64], sizes = [2, 32], strides = [1, 1]} : vector<2x96xf32> to vector<2x32xf32>
    %163 = arith.mulf %161, %147 : vector<2x32xf32>
    %164 = arith.mulf %160, %159 : vector<2x32xf32>
    %165 = arith.addf %163, %164 : vector<2x32xf32>
    %166 = math.tanh %165 : vector<2x32xf32>
    %167 = arith.mulf %162, %166 : vector<2x32xf32>
    %cst_44 = arith.constant dense<0.000000e+00> : vector<2x128xf32>
    %168 = tpu.matmul %167, %1, %cst_44 {dimension_numbers = #tpu.dot_dimension_numbers<[1], [0], [0], [1], [0, 0, 1, 1], [], []>} : vector<2x32xf32>, vector<32x128xf32>, vector<2x128xf32> -> vector<2x128xf32>
    %169 = arith.addf %58, %168 : vector<2x128xf32>
    %170 = vector.extract_strided_slice %169 {offsets = [0, 0], sizes = [2, 96], strides = [1, 1]} : vector<2x128xf32> to vector<2x96xf32>
    %171 = arith.negf %170 : vector<2x96xf32>
    %172 = math.exp %171 : vector<2x96xf32>
    %cst_45 = arith.constant 1.000000e+00 : f32
    %173 = vector.broadcast %cst_45 : f32 to vector<2x96xf32>
    %174 = arith.addf %173, %172 : vector<2x96xf32>
    %175 = arith.divf %173, %174 : vector<2x96xf32>
    %176 = vector.extract_strided_slice %169 {offsets = [0, 96], sizes = [2, 32], strides = [1, 1]} : vector<2x128xf32> to vector<2x32xf32>
    %177 = math.tanh %176 : vector<2x32xf32>
    %178 = vector.extract_strided_slice %175 {offsets = [0, 0], sizes = [2, 32], strides = [1, 1]} : vector<2x96xf32> to vector<2x32xf32>
    %179 = vector.extract_strided_slice %175 {offsets = [0, 32], sizes = [2, 32], strides = [1, 1]} : vector<2x96xf32> to vector<2x32xf32>
    %180 = vector.extract_strided_slice %175 {offsets = [0, 64], sizes = [2, 32], strides = [1, 1]} : vector<2x96xf32> to vector<2x32xf32>
    %181 = arith.mulf %179, %165 : vector<2x32xf32>
    %182 = arith.mulf %178, %177 : vector<2x32xf32>
    %183 = arith.addf %181, %182 : vector<2x32xf32>
    %184 = math.tanh %183 : vector<2x32xf32>
    %185 = arith.mulf %180, %184 : vector<2x32xf32>
    %cst_46 = arith.constant dense<0.000000e+00> : vector<2x128xf32>
    %186 = tpu.matmul %185, %1, %cst_46 {dimension_numbers = #tpu.dot_dimension_numbers<[1], [0], [0], [1], [0, 0, 1, 1], [], []>} : vector<2x32xf32>, vector<32x128xf32>, vector<2x128xf32> -> vector<2x128xf32>
    %187 = arith.addf %64, %186 : vector<2x128xf32>
    %188 = vector.extract_strided_slice %187 {offsets = [0, 0], sizes = [2, 96], strides = [1, 1]} : vector<2x128xf32> to vector<2x96xf32>
    %189 = arith.negf %188 : vector<2x96xf32>
    %190 = math.exp %189 : vector<2x96xf32>
    %cst_47 = arith.constant 1.000000e+00 : f32
    %191 = vector.broadcast %cst_47 : f32 to vector<2x96xf32>
    %192 = arith.addf %191, %190 : vector<2x96xf32>
    %193 = arith.divf %191, %192 : vector<2x96xf32>
    %194 = vector.extract_strided_slice %187 {offsets = [0, 96], sizes = [2, 32], strides = [1, 1]} : vector<2x128xf32> to vector<2x32xf32>
    %195 = math.tanh %194 : vector<2x32xf32>
    %196 = vector.extract_strided_slice %193 {offsets = [0, 0], sizes = [2, 32], strides = [1, 1]} : vector<2x96xf32> to vector<2x32xf32>
    %197 = vector.extract_strided_slice %193 {offsets = [0, 32], sizes = [2, 32], strides = [1, 1]} : vector<2x96xf32> to vector<2x32xf32>
    %198 = vector.extract_strided_slice %193 {offsets = [0, 64], sizes = [2, 32], strides = [1, 1]} : vector<2x96xf32> to vector<2x32xf32>
    %199 = arith.mulf %197, %183 : vector<2x32xf32>
    %200 = arith.mulf %196, %195 : vector<2x32xf32>
    %201 = arith.addf %199, %200 : vector<2x32xf32>
    %202 = math.tanh %201 : vector<2x32xf32>
    %203 = arith.mulf %198, %202 : vector<2x32xf32>
    %cst_48 = arith.constant dense<0.000000e+00> : vector<2x128xf32>
    %204 = tpu.matmul %203, %5, %cst_48 {dimension_numbers = #tpu.dot_dimension_numbers<[1], [0], [0], [1], [0, 0, 1, 1], [], []>} : vector<2x32xf32>, vector<32x128xf32>, vector<2x128xf32> -> vector<2x128xf32>
    %205 = arith.addf %204, %8 : vector<2x128xf32>
    %206 = vector.extract_strided_slice %205 {offsets = [0, 0], sizes = [2, 96], strides = [1, 1]} : vector<2x128xf32> to vector<2x96xf32>
    %207 = arith.negf %206 : vector<2x96xf32>
    %208 = math.exp %207 : vector<2x96xf32>
    %cst_49 = arith.constant 1.000000e+00 : f32
    %209 = vector.broadcast %cst_49 : f32 to vector<2x96xf32>
    %210 = arith.addf %209, %208 : vector<2x96xf32>
    %211 = arith.divf %209, %210 : vector<2x96xf32>
    %212 = vector.extract_strided_slice %205 {offsets = [0, 96], sizes = [2, 32], strides = [1, 1]} : vector<2x128xf32> to vector<2x32xf32>
    %213 = math.tanh %212 : vector<2x32xf32>
    %214 = vector.extract_strided_slice %211 {offsets = [0, 0], sizes = [2, 32], strides = [1, 1]} : vector<2x96xf32> to vector<2x32xf32>
    %215 = vector.extract_strided_slice %211 {offsets = [0, 32], sizes = [2, 32], strides = [1, 1]} : vector<2x96xf32> to vector<2x32xf32>
    %216 = vector.extract_strided_slice %211 {offsets = [0, 64], sizes = [2, 32], strides = [1, 1]} : vector<2x96xf32> to vector<2x32xf32>
    %217 = arith.mulf %215, %201 : vector<2x32xf32>
    %218 = arith.mulf %214, %213 : vector<2x32xf32>
    %219 = arith.addf %217, %218 : vector<2x32xf32>
    %220 = math.tanh %219 : vector<2x32xf32>
    %221 = arith.mulf %216, %220 : vector<2x32xf32>
    %cst_50 = arith.constant dense<0.000000e+00> : vector<2x128xf32>
    %222 = tpu.matmul %221, %9, %cst_50 {dimension_numbers = #tpu.dot_dimension_numbers<[1], [0], [0], [1], [0, 0, 1, 1], [], []>} : vector<2x32xf32>, vector<32x128xf32>, vector<2x128xf32> -> vector<2x128xf32>
    %223 = arith.addf %222, %12 : vector<2x128xf32>
    %224 = vector.extract_strided_slice %223 {offsets = [0, 0], sizes = [2, 96], strides = [1, 1]} : vector<2x128xf32> to vector<2x96xf32>
    %225 = arith.negf %224 : vector<2x96xf32>
    %226 = math.exp %225 : vector<2x96xf32>
    %cst_51 = arith.constant 1.000000e+00 : f32
    %227 = vector.broadcast %cst_51 : f32 to vector<2x96xf32>
    %228 = arith.addf %227, %226 : vector<2x96xf32>
    %229 = arith.divf %227, %228 : vector<2x96xf32>
    %230 = vector.extract_strided_slice %223 {offsets = [0, 96], sizes = [2, 32], strides = [1, 1]} : vector<2x128xf32> to vector<2x32xf32>
    %231 = math.tanh %230 : vector<2x32xf32>
    %232 = vector.extract_strided_slice %229 {offsets = [0, 0], sizes = [2, 32], strides = [1, 1]} : vector<2x96xf32> to vector<2x32xf32>
    %233 = vector.extract_strided_slice %229 {offsets = [0, 32], sizes = [2, 32], strides = [1, 1]} : vector<2x96xf32> to vector<2x32xf32>
    %234 = vector.extract_strided_slice %229 {offsets = [0, 64], sizes = [2, 32], strides = [1, 1]} : vector<2x96xf32> to vector<2x32xf32>
    %235 = arith.mulf %233, %219 : vector<2x32xf32>
    %236 = arith.mulf %232, %231 : vector<2x32xf32>
    %237 = arith.addf %235, %236 : vector<2x32xf32>
    %238 = math.tanh %237 : vector<2x32xf32>
    %239 = arith.mulf %234, %238 : vector<2x32xf32>
    %cst_52 = arith.constant dense<0.000000e+00> : vector<2x128xf32>
    %240 = tpu.matmul %239, %9, %cst_52 {dimension_numbers = #tpu.dot_dimension_numbers<[1], [0], [0], [1], [0, 0, 1, 1], [], []>} : vector<2x32xf32>, vector<32x128xf32>, vector<2x128xf32> -> vector<2x128xf32>
    %241 = arith.addf %240, %12 : vector<2x128xf32>
    %242 = vector.extract_strided_slice %241 {offsets = [0, 0], sizes = [2, 96], strides = [1, 1]} : vector<2x128xf32> to vector<2x96xf32>
    %243 = arith.negf %242 : vector<2x96xf32>
    %244 = math.exp %243 : vector<2x96xf32>
    %cst_53 = arith.constant 1.000000e+00 : f32
    %245 = vector.broadcast %cst_53 : f32 to vector<2x96xf32>
    %246 = arith.addf %245, %244 : vector<2x96xf32>
    %247 = arith.divf %245, %246 : vector<2x96xf32>
    %248 = vector.extract_strided_slice %241 {offsets = [0, 96], sizes = [2, 32], strides = [1, 1]} : vector<2x128xf32> to vector<2x32xf32>
    %249 = math.tanh %248 : vector<2x32xf32>
    %250 = vector.extract_strided_slice %247 {offsets = [0, 0], sizes = [2, 32], strides = [1, 1]} : vector<2x96xf32> to vector<2x32xf32>
    %251 = vector.extract_strided_slice %247 {offsets = [0, 32], sizes = [2, 32], strides = [1, 1]} : vector<2x96xf32> to vector<2x32xf32>
    %252 = vector.extract_strided_slice %247 {offsets = [0, 64], sizes = [2, 32], strides = [1, 1]} : vector<2x96xf32> to vector<2x32xf32>
    %253 = arith.mulf %251, %237 : vector<2x32xf32>
    %254 = arith.mulf %250, %249 : vector<2x32xf32>
    %255 = arith.addf %253, %254 : vector<2x32xf32>
    %256 = math.tanh %255 : vector<2x32xf32>
    %257 = arith.mulf %252, %256 : vector<2x32xf32>
    %cst_54 = arith.constant dense<0.000000e+00> : vector<2x128xf32>
    %258 = tpu.matmul %257, %9, %cst_54 {dimension_numbers = #tpu.dot_dimension_numbers<[1], [0], [0], [1], [0, 0, 1, 1], [], []>} : vector<2x32xf32>, vector<32x128xf32>, vector<2x128xf32> -> vector<2x128xf32>
    %259 = arith.addf %258, %12 : vector<2x128xf32>
    %260 = vector.extract_strided_slice %259 {offsets = [0, 0], sizes = [2, 96], strides = [1, 1]} : vector<2x128xf32> to vector<2x96xf32>
    %261 = arith.negf %260 : vector<2x96xf32>
    %262 = math.exp %261 : vector<2x96xf32>
    %cst_55 = arith.constant 1.000000e+00 : f32
    %263 = vector.broadcast %cst_55 : f32 to vector<2x96xf32>
    %264 = arith.addf %263, %262 : vector<2x96xf32>
    %265 = arith.divf %263, %264 : vector<2x96xf32>
    %266 = vector.extract_strided_slice %259 {offsets = [0, 96], sizes = [2, 32], strides = [1, 1]} : vector<2x128xf32> to vector<2x32xf32>
    %267 = math.tanh %266 : vector<2x32xf32>
    %268 = vector.extract_strided_slice %265 {offsets = [0, 0], sizes = [2, 32], strides = [1, 1]} : vector<2x96xf32> to vector<2x32xf32>
    %269 = vector.extract_strided_slice %265 {offsets = [0, 32], sizes = [2, 32], strides = [1, 1]} : vector<2x96xf32> to vector<2x32xf32>
    %270 = vector.extract_strided_slice %265 {offsets = [0, 64], sizes = [2, 32], strides = [1, 1]} : vector<2x96xf32> to vector<2x32xf32>
    %271 = arith.mulf %269, %255 : vector<2x32xf32>
    %272 = arith.mulf %268, %267 : vector<2x32xf32>
    %273 = arith.addf %271, %272 : vector<2x32xf32>
    %274 = math.tanh %273 : vector<2x32xf32>
    %275 = arith.mulf %270, %274 : vector<2x32xf32>
    %cst_56 = arith.constant dense<0.000000e+00> : vector<2x128xf32>
    %276 = tpu.matmul %275, %9, %cst_56 {dimension_numbers = #tpu.dot_dimension_numbers<[1], [0], [0], [1], [0, 0, 1, 1], [], []>} : vector<2x32xf32>, vector<32x128xf32>, vector<2x128xf32> -> vector<2x128xf32>
    %277 = arith.addf %276, %12 : vector<2x128xf32>
    %278 = vector.extract_strided_slice %277 {offsets = [0, 0], sizes = [2, 96], strides = [1, 1]} : vector<2x128xf32> to vector<2x96xf32>
    %279 = arith.negf %278 : vector<2x96xf32>
    %280 = math.exp %279 : vector<2x96xf32>
    %cst_57 = arith.constant 1.000000e+00 : f32
    %281 = vector.broadcast %cst_57 : f32 to vector<2x96xf32>
    %282 = arith.addf %281, %280 : vector<2x96xf32>
    %283 = arith.divf %281, %282 : vector<2x96xf32>
    %284 = vector.extract_strided_slice %277 {offsets = [0, 96], sizes = [2, 32], strides = [1, 1]} : vector<2x128xf32> to vector<2x32xf32>
    %285 = math.tanh %284 : vector<2x32xf32>
    %286 = vector.extract_strided_slice %283 {offsets = [0, 0], sizes = [2, 32], strides = [1, 1]} : vector<2x96xf32> to vector<2x32xf32>
    %287 = vector.extract_strided_slice %283 {offsets = [0, 32], sizes = [2, 32], strides = [1, 1]} : vector<2x96xf32> to vector<2x32xf32>
    %288 = vector.extract_strided_slice %283 {offsets = [0, 64], sizes = [2, 32], strides = [1, 1]} : vector<2x96xf32> to vector<2x32xf32>
    %289 = arith.mulf %287, %273 : vector<2x32xf32>
    %290 = arith.mulf %286, %285 : vector<2x32xf32>
    %291 = arith.addf %289, %290 : vector<2x32xf32>
    %292 = math.tanh %291 : vector<2x32xf32>
    %293 = arith.mulf %288, %292 : vector<2x32xf32>
    %cst_58 = arith.constant dense<0.000000e+00> : vector<2x128xf32>
    %294 = tpu.matmul %293, %9, %cst_58 {dimension_numbers = #tpu.dot_dimension_numbers<[1], [0], [0], [1], [0, 0, 1, 1], [], []>} : vector<2x32xf32>, vector<32x128xf32>, vector<2x128xf32> -> vector<2x128xf32>
    %295 = arith.addf %294, %12 : vector<2x128xf32>
    %296 = vector.extract_strided_slice %295 {offsets = [0, 0], sizes = [2, 96], strides = [1, 1]} : vector<2x128xf32> to vector<2x96xf32>
    %297 = arith.negf %296 : vector<2x96xf32>
    %298 = math.exp %297 : vector<2x96xf32>
    %cst_59 = arith.constant 1.000000e+00 : f32
    %299 = vector.broadcast %cst_59 : f32 to vector<2x96xf32>
    %300 = arith.addf %299, %298 : vector<2x96xf32>
    %301 = arith.divf %299, %300 : vector<2x96xf32>
    %302 = vector.extract_strided_slice %295 {offsets = [0, 96], sizes = [2, 32], strides = [1, 1]} : vector<2x128xf32> to vector<2x32xf32>
    %303 = math.tanh %302 : vector<2x32xf32>
    %304 = vector.extract_strided_slice %301 {offsets = [0, 0], sizes = [2, 32], strides = [1, 1]} : vector<2x96xf32> to vector<2x32xf32>
    %305 = vector.extract_strided_slice %301 {offsets = [0, 32], sizes = [2, 32], strides = [1, 1]} : vector<2x96xf32> to vector<2x32xf32>
    %306 = vector.extract_strided_slice %301 {offsets = [0, 64], sizes = [2, 32], strides = [1, 1]} : vector<2x96xf32> to vector<2x32xf32>
    %307 = arith.mulf %305, %291 : vector<2x32xf32>
    %308 = arith.mulf %304, %303 : vector<2x32xf32>
    %309 = arith.addf %307, %308 : vector<2x32xf32>
    %310 = math.tanh %309 : vector<2x32xf32>
    %311 = arith.mulf %306, %310 : vector<2x32xf32>
    %cst_60 = arith.constant dense<0.000000e+00> : vector<2x128xf32>
    %312 = tpu.matmul %311, %9, %cst_60 {dimension_numbers = #tpu.dot_dimension_numbers<[1], [0], [0], [1], [0, 0, 1, 1], [], []>} : vector<2x32xf32>, vector<32x128xf32>, vector<2x128xf32> -> vector<2x128xf32>
    %313 = arith.addf %312, %12 : vector<2x128xf32>
    %314 = vector.extract_strided_slice %313 {offsets = [0, 0], sizes = [2, 96], strides = [1, 1]} : vector<2x128xf32> to vector<2x96xf32>
    %315 = arith.negf %314 : vector<2x96xf32>
    %316 = math.exp %315 : vector<2x96xf32>
    %cst_61 = arith.constant 1.000000e+00 : f32
    %317 = vector.broadcast %cst_61 : f32 to vector<2x96xf32>
    %318 = arith.addf %317, %316 : vector<2x96xf32>
    %319 = arith.divf %317, %318 : vector<2x96xf32>
    %320 = vector.extract_strided_slice %313 {offsets = [0, 96], sizes = [2, 32], strides = [1, 1]} : vector<2x128xf32> to vector<2x32xf32>
    %321 = math.tanh %320 : vector<2x32xf32>
    %322 = vector.extract_strided_slice %319 {offsets = [0, 0], sizes = [2, 32], strides = [1, 1]} : vector<2x96xf32> to vector<2x32xf32>
    %323 = vector.extract_strided_slice %319 {offsets = [0, 32], sizes = [2, 32], strides = [1, 1]} : vector<2x96xf32> to vector<2x32xf32>
    %324 = vector.extract_strided_slice %319 {offsets = [0, 64], sizes = [2, 32], strides = [1, 1]} : vector<2x96xf32> to vector<2x32xf32>
    %325 = arith.mulf %323, %309 : vector<2x32xf32>
    %326 = arith.mulf %322, %321 : vector<2x32xf32>
    %327 = arith.addf %325, %326 : vector<2x32xf32>
    %328 = math.tanh %327 : vector<2x32xf32>
    %329 = arith.mulf %324, %328 : vector<2x32xf32>
    %cst_62 = arith.constant dense<0.000000e+00> : vector<2x128xf32>
    %330 = tpu.matmul %329, %9, %cst_62 {dimension_numbers = #tpu.dot_dimension_numbers<[1], [0], [0], [1], [0, 0, 1, 1], [], []>} : vector<2x32xf32>, vector<32x128xf32>, vector<2x128xf32> -> vector<2x128xf32>
    %331 = arith.addf %330, %12 : vector<2x128xf32>
    %332 = vector.extract_strided_slice %331 {offsets = [0, 0], sizes = [2, 96], strides = [1, 1]} : vector<2x128xf32> to vector<2x96xf32>
    %333 = arith.negf %332 : vector<2x96xf32>
    %334 = math.exp %333 : vector<2x96xf32>
    %cst_63 = arith.constant 1.000000e+00 : f32
    %335 = vector.broadcast %cst_63 : f32 to vector<2x96xf32>
    %336 = arith.addf %335, %334 : vector<2x96xf32>
    %337 = arith.divf %335, %336 : vector<2x96xf32>
    %338 = vector.extract_strided_slice %331 {offsets = [0, 96], sizes = [2, 32], strides = [1, 1]} : vector<2x128xf32> to vector<2x32xf32>
    %339 = math.tanh %338 : vector<2x32xf32>
    %340 = vector.extract_strided_slice %337 {offsets = [0, 0], sizes = [2, 32], strides = [1, 1]} : vector<2x96xf32> to vector<2x32xf32>
    %341 = vector.extract_strided_slice %337 {offsets = [0, 32], sizes = [2, 32], strides = [1, 1]} : vector<2x96xf32> to vector<2x32xf32>
    %342 = vector.extract_strided_slice %337 {offsets = [0, 64], sizes = [2, 32], strides = [1, 1]} : vector<2x96xf32> to vector<2x32xf32>
    %343 = arith.mulf %341, %327 : vector<2x32xf32>
    %344 = arith.mulf %340, %339 : vector<2x32xf32>
    %345 = arith.addf %343, %344 : vector<2x32xf32>
    %346 = math.tanh %345 : vector<2x32xf32>
    %347 = arith.mulf %342, %346 : vector<2x32xf32>
    %348 = vector.broadcast %13 : vector<1x32xf32> to vector<2x32xf32>
    %349 = arith.mulf %221, %348 : vector<2x32xf32>
    %cst_64 = arith.constant dense<0.000000e+00> : vector<2xf32>
    %350 = vector.multi_reduction <add>, %349, %cst_64 [1] : vector<2x32xf32> to vector<2xf32>
    %351 = vector.shape_cast %350 : vector<2xf32> to vector<2x1xf32>
    %352 = arith.addf %351, %16 : vector<2x1xf32>
    %353 = vector.broadcast %13 : vector<1x32xf32> to vector<2x32xf32>
    %354 = arith.mulf %239, %353 : vector<2x32xf32>
    %cst_65 = arith.constant dense<0.000000e+00> : vector<2xf32>
    %355 = vector.multi_reduction <add>, %354, %cst_65 [1] : vector<2x32xf32> to vector<2xf32>
    %356 = vector.shape_cast %355 : vector<2xf32> to vector<2x1xf32>
    %357 = arith.addf %356, %16 : vector<2x1xf32>
    %358 = vector.broadcast %13 : vector<1x32xf32> to vector<2x32xf32>
    %359 = arith.mulf %257, %358 : vector<2x32xf32>
    %cst_66 = arith.constant dense<0.000000e+00> : vector<2xf32>
    %360 = vector.multi_reduction <add>, %359, %cst_66 [1] : vector<2x32xf32> to vector<2xf32>
    %361 = vector.shape_cast %360 : vector<2xf32> to vector<2x1xf32>
    %362 = arith.addf %361, %16 : vector<2x1xf32>
    %363 = vector.broadcast %13 : vector<1x32xf32> to vector<2x32xf32>
    %364 = arith.mulf %275, %363 : vector<2x32xf32>
    %cst_67 = arith.constant dense<0.000000e+00> : vector<2xf32>
    %365 = vector.multi_reduction <add>, %364, %cst_67 [1] : vector<2x32xf32> to vector<2xf32>
    %366 = vector.shape_cast %365 : vector<2xf32> to vector<2x1xf32>
    %367 = arith.addf %366, %16 : vector<2x1xf32>
    %368 = vector.broadcast %13 : vector<1x32xf32> to vector<2x32xf32>
    %369 = arith.mulf %293, %368 : vector<2x32xf32>
    %cst_68 = arith.constant dense<0.000000e+00> : vector<2xf32>
    %370 = vector.multi_reduction <add>, %369, %cst_68 [1] : vector<2x32xf32> to vector<2xf32>
    %371 = vector.shape_cast %370 : vector<2xf32> to vector<2x1xf32>
    %372 = arith.addf %371, %16 : vector<2x1xf32>
    %373 = vector.broadcast %13 : vector<1x32xf32> to vector<2x32xf32>
    %374 = arith.mulf %311, %373 : vector<2x32xf32>
    %cst_69 = arith.constant dense<0.000000e+00> : vector<2xf32>
    %375 = vector.multi_reduction <add>, %374, %cst_69 [1] : vector<2x32xf32> to vector<2xf32>
    %376 = vector.shape_cast %375 : vector<2xf32> to vector<2x1xf32>
    %377 = arith.addf %376, %16 : vector<2x1xf32>
    %378 = vector.broadcast %13 : vector<1x32xf32> to vector<2x32xf32>
    %379 = arith.mulf %329, %378 : vector<2x32xf32>
    %cst_70 = arith.constant dense<0.000000e+00> : vector<2xf32>
    %380 = vector.multi_reduction <add>, %379, %cst_70 [1] : vector<2x32xf32> to vector<2xf32>
    %381 = vector.shape_cast %380 : vector<2xf32> to vector<2x1xf32>
    %382 = arith.addf %381, %16 : vector<2x1xf32>
    %383 = vector.broadcast %13 : vector<1x32xf32> to vector<2x32xf32>
    %384 = arith.mulf %347, %383 : vector<2x32xf32>
    %cst_71 = arith.constant dense<0.000000e+00> : vector<2xf32>
    %385 = vector.multi_reduction <add>, %384, %cst_71 [1] : vector<2x32xf32> to vector<2xf32>
    %386 = vector.shape_cast %385 : vector<2xf32> to vector<2x1xf32>
    %387 = arith.addf %386, %16 : vector<2x1xf32>
    %388 = tpu.concatenate %352, %357, %362, %367, %372, %377, %382, %387 in 1 : vector<2x1xf32>, vector<2x1xf32>, vector<2x1xf32>, vector<2x1xf32>, vector<2x1xf32>, vector<2x1xf32>, vector<2x1xf32>, vector<2x1xf32> -> vector<2x8xf32>
    %c0_72 = arith.constant 0 : index
    %c0_73 = arith.constant 0 : index
    %389 = vector.load %arg10[%c0_72, %c0_73] : memref<2x8xf32, #tpu.memory_space<vmem>>, vector<2x8xf32>
    tpu.vector_store %arg10[%c0_72, %c0_73], %388 {strides = array<i32>} : memref<2x8xf32, #tpu.memory_space<vmem>>, vector<2x8xf32>,
    return
  }
}

</mosaic_0001>

<bundles_post_ra>
// kernel: tpu_custom_call.1
= control target key start
LH: loop header
LB: loop body
LE: loop exit
PB: predicated region body
PF: predicated region fallthrough
CT: control target
= control target key end

     0   :  { %s2842_s0 = inlined_call_operand.vmem [shape: f32[8,2,1], index: 0, kind: input, shape index: {}]   ;;  %s2843_s1 = inlined_call_operand.vmem [shape: f32[1,128], index: 1, kind: input, shape index: {}]   ;;  %s2844_s2 = inlined_call_operand.hbm [shape: f32[32,128], index: 2, kind: input, shape index: {}]   ;;  %s2845_s3 = inlined_call_operand.vmem [shape: f32[1,128], index: 3, kind: input, shape index: {}]   ;;  %s2846_s4 = inlined_call_operand.vmem [shape: f32[32,128], index: 4, kind: input, shape index: {}]   ;;  %s2847_s5 = inlined_call_operand.vmem [shape: f32[1,128], index: 5, kind: input, shape index: {}]   ;;  %s2848_s6 = inlined_call_operand.hbm [shape: f32[32,128], index: 6, kind: input, shape index: {}]   ;;  %s2849_s7 = inlined_call_operand.vmem [shape: f32[1,128], index: 7, kind: input, shape index: {}]   ;;  %s2850_s8 = inlined_call_operand.vmem [shape: f32[1,32], index: 8, kind: input, shape index: {}]   ;;  %s2851_s9 = inlined_call_operand.<no memory space> [shape: f32[1,1], index: 9, kind: input, shape index: {}]   ;;  %s2852_s10 = inlined_call_operand.hbm [shape: f32[2,8], index: 10, kind: output, shape index: {}]  }
   0x1   :  { %v15_v0 = vstv %s2851_s9 }
   0x2   :  { %16 = vst [vmem:[#allocation2] sm:$0x1] %v15_v0 }
   0x3   :  { %17 = vsyncpa [#allocation4], 0 }
   0x4   :  { %18 = vsyncpa [#allocation7], 0 }
   0x5   :  { %19 = vsyncpa [#allocation5], 0  ;;  %s2435_s15 = smov [#allocation3]   ;;  %s2363_s19 = scalar_lea.hbm %s2844_s2, 512 }
   0x6   :  { %s29_s16 = sshll.u32 %s2435_s15, 4  ;;  %p2364_p0 = scmp.ne.s32.totalorder %s2844_s2, %s2363_s19  ;;  %s30_s16 = int_to_ptr.vmem [resolvable:$true] %s29_s16 }
   0x7   :  { %p2367_p1 = scmp.lt.u32.totalorder %s2363_s19, %s2844_s2 }
   0x9   :  { %p2369_p2 = pnand %p2367_p1, %p2364_p0 }
   0xb   :  { %2372 = shalt.err (!%p2369_p2)
}
   0xc   :  { %s2373_s9 = scalar_lea.vmem %s30_s16, 512  ;;  %p2378_p4 = scmp.lt.s32.totalorder %s30_s16, %s30_s16 }
   0xd   :  { %p2374_p3 = scmp.ne.s32.totalorder %s30_s16, %s2373_s9  ;;  %p2379_p5 = scmp.lt.s32.totalorder %s2373_s9, %s2373_s9 }
   0xf   :  { %p2380_p6 = por %p2379_p5, %p2378_p4 }
  0x11   :  { %p2381_p7 = pnand %p2380_p6, %p2374_p3 }
  0x13   :  { %2384 = shalt.err (!%p2381_p7)
}
  0x14   :  { %s2436_s24 = smov 128   ;;  %s2437_s25 = smov 8  }
  0x15   :  { %35 = dma.hbm_to_vmem [thread:$0]  %s2844_s2, 512, %s30_s16, [#allocation4], %s2436_s24, %s2436_s24, %s2437_s25  }
  0x16   :  { %s2438_s28 = smov [#allocation6]   ;;  %s2385_s12 = scalar_lea.hbm %s2848_s6, 512 }
  0x17   :  { %s47_s29 = sshll.u32 %s2438_s28, 4  ;;  %p2386_p8 = scmp.ne.s32.totalorder %s2848_s6, %s2385_s12  ;;  %s48_s29 = int_to_ptr.vmem [resolvable:$true] %s47_s29 }
  0x18   :  { %p2389_p9 = scmp.lt.u32.totalorder %s2385_s12, %s2848_s6 }
  0x1a   :  { %p2391_p10 = pnand %p2389_p9, %p2386_p8 }
  0x1c   :  { %2394 = shalt.err (!%p2391_p10)
}
  0x1d   :  { %s2395_s18 = scalar_lea.vmem %s48_s29, 512  ;;  %p2400_p12 = scmp.lt.s32.totalorder %s48_s29, %s48_s29 }
  0x1e   :  { %p2396_p11 = scmp.ne.s32.totalorder %s48_s29, %s2395_s18  ;;  %p2401_p13 = scmp.lt.s32.totalorder %s2395_s18, %s2395_s18 }
  0x20   :  { %p2402_p0 = por %p2401_p13, %p2400_p12 }
  0x22   :  { %p2403_p1 = pnand %p2402_p0, %p2396_p11 }
  0x24   :  { %2406 = shalt.err (!%p2403_p1)
}
  0x25   :  { %53 = dma.hbm_to_vmem [thread:$0]  %s2848_s6, 512, %s48_s29, [#allocation7], %s2436_s24, %s2436_s24, %s2437_s25  }
  0x26   :  { %2429 = dma.done.wait [#allocation4], 512  }
  0x27   :  { %2430 = vsyncadd [#allocation4], 4294966784 }
  0x28   :  { %2431 = dma.done.wait [#allocation7], 512  }
  0x29   :  { %2432 = vsyncadd [#allocation7], 4294966784  ;;  %v2439_v1 = vmov 0   ;;  %v108_v2 = vld [vmem:[%s2842_s0] sm:$0x3]  ;;  %s2440_s9 = smov 32  }
  0x2a   :  { %2233 = vset.pattern.permute.xlu0 %v2439_v1  ;;  %2234 = vset.pattern.permute.xlu1 %v2439_v1  ;;  %v2541_v3 = vld [vmem:[%s2843_s1] ss:$0 sm:$0xff]  ;;  %v1846_v9 = vld [vmem:[%s2842_s0 + $0x2] sm:$0x3]  ;;  %v68_v17 = vld [vmem:[#allocation3 + $0x8] sm:$0xff]  ;;  %v2441_v19 = vmov 0.0|0.0  }
  0x2b   :  { %111 = vperm.xlu0 %2233, %v108_v2   ;;  %v2546_v5 = vld [vmem:[%s2845_s3] ss:$0 sm:$0xff]  ;;  %v67_v16 = vld [vmem:[#allocation3] sm:$0xff]  ;;  %v69_v18 = vld [vmem:[#allocation3 + $0x10] sm:$0xff]  ;;  %2125 = vmatprep.subr.bf16.mxu0 %v2441_v19  ;;  %vm2442_vm0 = vmmov 0   ;;  %v2443_v22 = vmov 0.0  }
  0x2c   :  { %v2556_v20 = vpack.c.bf16 %v68_v17, %v67_v16  ;;  %v70_v21 = vld [vmem:[#allocation3 + $0x18] sm:$0xff]  ;;  %1968 = vmatprep.mubr.msk.f32.mxu0 %vm2442_vm0, %v2443_v22  ;;  %2131 = vmatprep.subr.bf16.mxu1 %v2441_v19  ;;  %s2444_s1 = smov 64   ;;  %vm206_vm1 = vcmask 261120   ;;  %v1847_v46 = vld [vmem:[%s2842_s0 + $0x4] sm:$0x3]  ;;  %vm1713_vm2 = vcmask 254976  }
  0x2d   :  { %1979 = vmatprep.mubr.msk.f32.mxu1 %vm2442_vm0, %v2443_v22  ;;  %v2564_v23 = vpack.c.bf16 %v70_v21, %v69_v18  ;;  %s2447_s25 = smov 2   ;;  %s2449_s3 = smov 5   ;;  %vm1809_vm3 = vcmask 7168   ;;  %vm1811_vm4 = vcmask 15360   ;;  %vm1813_vm5 = vcmask 23552  }
  0x2e   :  { %2127 = vmatpush3.bf16.msra.mxu0 %v2556_v20  ;;  %2133 = vmatpush3.bf16.msra.mxu1 %v2556_v20  ;;  %s2450_s26 = smov 6   ;;  %s2451_s27 = smov 7   ;;  %vm1815_vm6 = vcmask 31744   ;;  %vm1817_vm7 = vcmask 39936   ;;  %vm1819_vm8 = vcmask 48128   ;;  %vm1821_vm9 = vcmask 56320  }
  0x2f   :  { %2128 = vmatprep.subr.bf16.mxu0 %v2441_v19  ;;  %2134 = vmatprep.subr.bf16.mxu1 %v2441_v19  ;;  %s2452_s28 = smov [#allocation8]   ;;  %vm1823_vm10 = vcmask 58368  }
  0x30   :  { %s1831_s29 = sshll.u32 %s2452_s28, 4  ;;  %s1832_s29 = int_to_ptr.vmem [resolvable:$true] %s1831_s29 }
  0x31   :  { %s2407_s30 = scalar_lea.vmem %s1832_s29, 32  ;;  %p2412_p3 = scmp.lt.s32.totalorder %s1832_s29, %s1832_s29 }
  0x32   :  { %2130 = vmatpush3.bf16.msra.mxu0 %v2564_v23  ;;  %2136 = vmatpush3.bf16.msra.mxu1 %v2564_v23  ;;  %p2408_p2 = scmp.ne.s32.totalorder %s1832_s29, %s2407_s30  ;;  %p2413_p4 = scmp.lt.s32.totalorder %s2407_s30, %s2407_s30 }
  0x33   :  { %2137 = vmatprep.subr.bf16.mxu0 %v2441_v19  ;;  %2143 = vmatprep.subr.bf16.mxu1 %v2441_v19 }
  0x34   :  { %p2414_p5 = por %p2413_p4, %p2412_p3 }
  0x36   :  { %p2415_p6 = pnand %p2414_p5, %p2408_p2 }
  0xaa   :  { %v112_v4 = vpop.permute.xlu0 %111 }
  0xab   :  { %v120_v6 = vmul.f32 %v2541_v3, %v112_v4  ;;  %v1848_v4 = vld [vmem:[%s2842_s0 + $0x6] sm:$0x3] }
  0xad   :  { %v121_v7 = vadd.f32 %v2546_v5, %v120_v6 }
  0xaf   :  { %2235 = vtanh.f32 %v121_v7  ;;  %v1853_v10 = vmul.f32 -1.442695, %v121_v7 }
  0xb1   :  { %2237 = vpow2.f32 %v1853_v10 }
  0xb9   :  { %v2236_v8 = vpop.eup %2235 }
  0xba   :  { %193 = vrot.lane.b32.xlu0 %v2236_v8, %s2440_s9 }
  0xbb   :  { %v2238_v11 = vpop.eup %2237 }
  0xbc   :  { %v188_v12 = vadd.f32 1.0, %v2238_v11 }
  0xbe   :  { %126 = vperm.xlu0 %2233, %v1846_v9   ;;  %2239 = vrcp.f32 %v188_v12 }
  0xc8   :  { %v2240_v13 = vpop.eup %2239 }
 0x12c   :  { %v194_v14 = vpop.permute.xlu0 %193 }
 0x12d   :  { %v196_v15 = vmul.f32 %v2240_v13, %v194_v14 }
 0x12f   :  { %2241 = vtanh.f32 %v196_v15  ;;  %288 = vrot.lane.b32.xlu0 %v196_v15, %s2440_s9 }
 0x139   :  { %v2242_v24 = vpop.eup %2241 }
 0x13a   :  { %199 = vrot.lane.b32.xlu1 %v2242_v24, %s2444_s1 }
 0x13d   :  { %v127_v28 = vpop.permute.xlu0 %126 }
 0x13e   :  { %v129_v29 = vmul.f32 %v2541_v3, %v127_v28 }
 0x140   :  { %v130_v30 = vadd.f32 %v2546_v5, %v129_v29 }
 0x1a1   :  { %v289_v41 = vpop.permute.xlu0 %288 }
 0x1ac   :  { %v200_v25 = vpop.permute.xlu1 %199 }
 0x1ad   :  { %v202_v26 = vmul.f32 %v2240_v13, %v200_v25 }
 0x1af   :  { %204 = vrot.lane.b32.xlu1 %v202_v26, %s2444_s1 }
 0x221   :  { %v205_v27 = vpop.permute.xlu1 %204 }
 0x222   :  { %1969 = vmatmul.mubr.msk.f32.vlgmr.msra.gmra.mrb[0].mxu0 %vm206_vm1, %v205_v27 }
 0x223   :  { %2139 = vmatpush3.bf16.msra.mxu0 %v2556_v20  ;;  %1990 = vmatprep.mubr.msk.f32.mxu0 %vm2442_vm0, %v2443_v22 }
 0x224   :  { %2140 = vmatprep.subr.bf16.mxu0 %v2441_v19 }
 0x227   :  { %2142 = vmatpush3.bf16.msra.mxu0 %v2564_v23 }
 0x228   :  { %2149 = vmatprep.subr.bf16.mxu0 %v2441_v19 }
 0x2f5   :  { %v275_v31 = vpop.f32.mrb[0].mxu0 }
 0x2f6   :  { %v279_v32 = vadd.f32 %v275_v31, %v130_v30  ;;  %v1970_v33 = vpop.f32.mrb[1].mxu0  ;;  %v1849_v30 = vld [vmem:[%s2842_s0 + $0x8] sm:$0x3] }
 0x2f8   :  { %2243 = vtanh.f32 %v279_v32  ;;  %v1855_v35 = vmul.f32 -1.442695, %v279_v32 }
 0x2fa   :  { %2245 = vpow2.f32 %v1855_v35 }
 0x302   :  { %v2244_v34 = vpop.eup %2243 }
 0x303   :  { %293 = vrot.lane.b32.xlu1 %v2244_v34, %s2440_s9 }
 0x304   :  { %v2246_v36 = vpop.eup %2245 }
 0x305   :  { %v283_v37 = vadd.f32 1.0, %v2246_v36 }
 0x307   :  { %2247 = vrcp.f32 %v283_v37 }
 0x311   :  { %v2248_v38 = vpop.eup %2247 }
 0x312   :  { %v291_v42 = vmul.f32 %v2248_v38, %v289_v41 }
 0x375   :  { %v294_v39 = vpop.permute.xlu1 %293 }
 0x376   :  { %v296_v40 = vmul.f32 %v2248_v38, %v294_v39 }
 0x378   :  { %298 = vrot.lane.b32.xlu1 %v296_v40, %s2440_s9 }
 0x3ea   :  { %v299_v43 = vpop.permute.xlu1 %298 }
 0x3eb   :  { %v301_v44 = vadd.f32 %v299_v43, %v291_v42 }
 0x3ed   :  { %2249 = vtanh.f32 %v301_v44 }
 0x3f7   :  { %v2250_v45 = vpop.eup %2249 }
 0x3f8   :  { %304 = vrot.lane.b32.xlu0 %v2250_v45, %s2440_s9 }
 0x3fc   :  { %135 = vperm.xlu0 %2233, %v1847_v46  }
 0x46a   :  { %v305_v47 = vpop.permute.xlu0 %304 }
 0x46b   :  { %v307_v48 = vmul.f32 %v2248_v38, %v305_v47 }
 0x46d   :  { %309 = vrot.lane.b32.xlu1 %v307_v48, %s2444_s1 }
 0x47b   :  { %v136_v50 = vpop.permute.xlu0 %135 }
 0x47c   :  { %v138_v51 = vmul.f32 %v2541_v3, %v136_v50 }
 0x47e   :  { %v139_v52 = vadd.f32 %v2546_v5, %v138_v51  ;;  %v1850_v51 = vld [vmem:[%s2842_s0 + $0xa] sm:$0x3] }
 0x4df   :  { %v310_v49 = vpop.permute.xlu1 %309 }
 0x4e0   :  { %1980 = vmatmul.mubr.msk.f32.vlgmr.msra.gmra.mrb[0].mxu1 %vm206_vm1, %v310_v49 }
 0x4e1   :  { %2145 = vmatpush3.bf16.msra.mxu1 %v2556_v20  ;;  %2001 = vmatprep.mubr.msk.f32.mxu1 %vm2442_vm0, %v2443_v22 }
 0x4e2   :  { %2146 = vmatprep.subr.bf16.mxu1 %v2441_v19 }
 0x4e5   :  { %2148 = vmatpush3.bf16.msra.mxu1 %v2564_v23 }
 0x4e6   :  { %2155 = vmatprep.subr.bf16.mxu1 %v2441_v19 }
 0x5b3   :  { %v379_v53 = vpop.f32.mrb[0].mxu1 }
 0x5b4   :  { %v383_v54 = vadd.f32 %v379_v53, %v139_v52  ;;  %v1981_v55 = vpop.f32.mrb[1].mxu1 }
 0x5b6   :  { %2251 = vtanh.f32 %v383_v54  ;;  %v1857_v57 = vmul.f32 -1.442695, %v383_v54 }
 0x5b8   :  { %2253 = vpow2.f32 %v1857_v57 }
 0x5c0   :  { %v2252_v56 = vpop.eup %2251 }
 0x5c1   :  { %393 = vrot.lane.b32.xlu1 %v2252_v56, %s2440_s9 }
 0x5c2   :  { %v2254_v58 = vpop.eup %2253 }
 0x5c3   :  { %v387_v59 = vadd.f32 1.0, %v2254_v58 }
 0x5c5   :  { %2255 = vrcp.f32 %v387_v59 }
 0x5cf   :  { %v2256_v60 = vpop.eup %2255 }
 0x5d0   :  { %v391_v63 = vmul.f32 %v2256_v60, %v301_v44 }
 0x633   :  { %v394_v61 = vpop.permute.xlu1 %393 }
 0x634   :  { %v396_v62 = vmul.f32 %v2256_v60, %v394_v61 }
 0x636   :  { %398 = vrot.lane.b32.xlu0 %v396_v62, %s2440_s9 }
 0x6a8   :  { %v399_v0 = vpop.permute.xlu0 %398 }
 0x6a9   :  { %v401_v1 = vadd.f32 %v399_v0, %v391_v63 }
 0x6ab   :  { %2257 = vtanh.f32 %v401_v1 }
 0x6b5   :  { %v2258_v2 = vpop.eup %2257 }
 0x6b6   :  { %404 = vrot.lane.b32.xlu1 %v2258_v2, %s2440_s9 }
 0x6ba   :  { %144 = vperm.xlu1 %2234, %v1848_v4  }
 0x728   :  { %v405_v6 = vpop.permute.xlu1 %404 }
 0x729   :  { %v407_v7 = vmul.f32 %v2256_v60, %v405_v6 }
 0x72b   :  { %409 = vrot.lane.b32.xlu0 %v407_v7, %s2444_s1 }
 0x739   :  { %v145_v9 = vpop.permute.xlu1 %144 }
 0x73a   :  { %v147_v10 = vmul.f32 %v2541_v3, %v145_v9 }
 0x73c   :  { %v148_v11 = vadd.f32 %v2546_v5, %v147_v10 }
 0x79d   :  { %v410_v8 = vpop.permute.xlu0 %409 }
 0x79e   :  { %1991 = vmatmul.mubr.msk.f32.vlgmr.msra.gmra.mrb[2].mxu0 %vm206_vm1, %v410_v8  ;;  %v1851_v8 = vld [vmem:[%s2842_s0 + $0xc] sm:$0x3] }
 0x79f   :  { %2151 = vmatpush3.bf16.msra.mxu0 %v2556_v20  ;;  %2012 = vmatprep.mubr.msk.f32.mxu0 %vm2442_vm0, %v2443_v22 }
 0x7a0   :  { %2152 = vmatprep.subr.bf16.mxu0 %v2441_v19 }
 0x7a3   :  { %2154 = vmatpush3.bf16.msra.mxu0 %v2564_v23 }
 0x7a4   :  { %2161 = vmatprep.subr.bf16.mxu0 %v2441_v19 }
 0x871   :  { %v479_v12 = vpop.f32.mrb[2].mxu0 }
 0x872   :  { %v483_v13 = vadd.f32 %v479_v12, %v148_v11  ;;  %v1992_v14 = vpop.f32.mrb[3].mxu0 }
 0x874   :  { %2259 = vtanh.f32 %v483_v13  ;;  %v1859_v16 = vmul.f32 -1.442695, %v483_v13 }
 0x876   :  { %2261 = vpow2.f32 %v1859_v16 }
 0x87e   :  { %v2260_v15 = vpop.eup %2259 }
 0x87f   :  { %493 = vrot.lane.b32.xlu0 %v2260_v15, %s2440_s9 }
 0x880   :  { %v2262_v17 = vpop.eup %2261 }
 0x881   :  { %v487_v18 = vadd.f32 1.0, %v2262_v17 }
 0x883   :  { %2263 = vrcp.f32 %v487_v18 }
 0x88d   :  { %v2264_v21 = vpop.eup %2263 }
 0x88e   :  { %v491_v26 = vmul.f32 %v2264_v21, %v401_v1 }
 0x8f1   :  { %v494_v24 = vpop.permute.xlu0 %493 }
 0x8f2   :  { %v496_v25 = vmul.f32 %v2264_v21, %v494_v24 }
 0x8f4   :  { %498 = vrot.lane.b32.xlu1 %v496_v25, %s2440_s9 }
 0x966   :  { %v499_v27 = vpop.permute.xlu1 %498 }
 0x967   :  { %v501_v28 = vadd.f32 %v499_v27, %v491_v26 }
 0x969   :  { %2265 = vtanh.f32 %v501_v28 }
 0x973   :  { %v2266_v29 = vpop.eup %2265 }
 0x974   :  { %504 = vrot.lane.b32.xlu0 %v2266_v29, %s2440_s9 }
 0x978   :  { %153 = vperm.xlu0 %2233, %v1849_v30  }
 0x9e6   :  { %v505_v31 = vpop.permute.xlu0 %504 }
 0x9e7   :  { %v507_v32 = vmul.f32 %v2264_v21, %v505_v31 }
 0x9e9   :  { %509 = vrot.lane.b32.xlu1 %v507_v32, %s2444_s1 }
 0x9f7   :  { %v154_v34 = vpop.permute.xlu0 %153 }
 0x9f8   :  { %v156_v35 = vmul.f32 %v2541_v3, %v154_v34 }
 0x9fa   :  { %v157_v36 = vadd.f32 %v2546_v5, %v156_v35 }
 0xa5b   :  { %v510_v33 = vpop.permute.xlu1 %509 }
 0xa5c   :  { %2002 = vmatmul.mubr.msk.f32.vlgmr.msra.gmra.mrb[2].mxu1 %vm206_vm1, %v510_v33  ;;  %v1852_v33 = vld [vmem:[%s2842_s0 + $0xe] sm:$0x3] }
 0xa5d   :  { %2157 = vmatpush3.bf16.msra.mxu1 %v2556_v20  ;;  %2023 = vmatprep.mubr.msk.f32.mxu1 %vm2442_vm0, %v2443_v22 }
 0xa5e   :  { %2158 = vmatprep.subr.bf16.mxu1 %v2441_v19 }
 0xa61   :  { %2160 = vmatpush3.bf16.msra.mxu1 %v2564_v23 }
 0xa62   :  { %2167 = vmatprep.subr.bf16.mxu1 %v2441_v19 }
 0xb2f   :  { %v579_v37 = vpop.f32.mrb[2].mxu1 }
 0xb30   :  { %v583_v38 = vadd.f32 %v579_v37, %v157_v36  ;;  %v2003_v39 = vpop.f32.mrb[3].mxu1 }
 0xb32   :  { %2267 = vtanh.f32 %v583_v38  ;;  %v1861_v41 = vmul.f32 -1.442695, %v583_v38 }
 0xb34   :  { %2269 = vpow2.f32 %v1861_v41 }
 0xb3c   :  { %v2268_v40 = vpop.eup %2267 }
 0xb3d   :  { %593 = vrot.lane.b32.xlu1 %v2268_v40, %s2440_s9 }
 0xb3e   :  { %v2270_v42 = vpop.eup %2269 }
 0xb3f   :  { %v587_v43 = vadd.f32 1.0, %v2270_v42 }
 0xb41   :  { %2271 = vrcp.f32 %v587_v43 }
 0xb4b   :  { %v2272_v44 = vpop.eup %2271 }
 0xb4c   :  { %v591_v47 = vmul.f32 %v2272_v44, %v501_v28 }
 0xbaf   :  { %v594_v45 = vpop.permute.xlu1 %593 }
 0xbb0   :  { %v596_v46 = vmul.f32 %v2272_v44, %v594_v45 }
 0xbb2   :  { %598 = vrot.lane.b32.xlu0 %v596_v46, %s2440_s9 }
 0xc24   :  { %v599_v48 = vpop.permute.xlu0 %598 }
 0xc25   :  { %v601_v49 = vadd.f32 %v599_v48, %v591_v47 }
 0xc27   :  { %2273 = vtanh.f32 %v601_v49 }
 0xc31   :  { %v2274_v50 = vpop.eup %2273 }
 0xc32   :  { %604 = vrot.lane.b32.xlu1 %v2274_v50, %s2440_s9 }
 0xc36   :  { %162 = vperm.xlu1 %2234, %v1850_v51   ;;  %v78_v51 = vld [vmem:[%s2846_s4] sm:$0xff] }
 0xca4   :  { %v605_v52 = vpop.permute.xlu1 %604 }
 0xca5   :  { %v607_v53 = vmul.f32 %v2272_v44, %v605_v52  ;;  %v79_v52 = vld [vmem:[%s2846_s4 + $0x8] sm:$0xff] }
 0xca7   :  { %609 = vrot.lane.b32.xlu0 %v607_v53, %s2444_s1  ;;  %v80_v53 = vld [vmem:[%s2846_s4 + $0x10] sm:$0xff] }
 0xcb5   :  { %v163_v55 = vpop.permute.xlu1 %162 }
 0xcb6   :  { %v165_v56 = vmul.f32 %v2541_v3, %v163_v55  ;;  %v81_v55 = vld [vmem:[%s2846_s4 + $0x18] sm:$0xff] }
 0xcb8   :  { %v166_v57 = vadd.f32 %v2546_v5, %v165_v56  ;;  %v2171_v56 = vpack.c.bf16 %v81_v55, %v80_v53 }
 0xd19   :  { %v610_v54 = vpop.permute.xlu0 %609 }
 0xd1a   :  { %2013 = vmatmul.mubr.msk.f32.vlgmr.msra.gmra.mrb[4].mxu0 %vm206_vm1, %v610_v54  ;;  %v2168_v54 = vpack.c.bf16 %v79_v52, %v78_v51 }
 0xd1b   :  { %2163 = vmatpush3.bf16.msra.mxu0 %v2556_v20  ;;  %2034 = vmatprep.mubr.msk.f32.mxu0 %vm2442_vm0, %v2443_v22 }
 0xd1c   :  { %2164 = vmatprep.subr.bf16.mxu0 %v2441_v19 }
 0xd1f   :  { %2166 = vmatpush3.bf16.msra.mxu0 %v2564_v23 }
 0xd20   :  { %2173 = vmatprep.subr.bf16.mxu0 %v2441_v19 }
 0xded   :  { %v679_v58 = vpop.f32.mrb[4].mxu0 }
 0xdee   :  { %v683_v59 = vadd.f32 %v679_v58, %v166_v57  ;;  %v2014_v60 = vpop.f32.mrb[5].mxu0 }
 0xdf0   :  { %2275 = vtanh.f32 %v683_v59  ;;  %v1863_v20 = vmul.f32 -1.442695, %v683_v59 }
 0xdf2   :  { %2277 = vpow2.f32 %v1863_v20 }
 0xdfa   :  { %v2276_v61 = vpop.eup %2275 }
 0xdfb   :  { %693 = vrot.lane.b32.xlu0 %v2276_v61, %s2440_s9  ;;  %v1842_v61 = vld [vmem:[%s2847_s5] ss:$0 sm:$0xff] }
 0xdfc   :  { %v2278_v62 = vpop.eup %2277 }
 0xdfd   :  { %v687_v63 = vadd.f32 1.0, %v2278_v62 }
 0xdff   :  { %2279 = vrcp.f32 %v687_v63 }
 0xe09   :  { %v2280_v23 = vpop.eup %2279 }
 0xe0a   :  { %v691_v2 = vmul.f32 %v2280_v23, %v601_v49 }
 0xe6d   :  { %v694_v0 = vpop.permute.xlu0 %693 }
 0xe6e   :  { %v696_v1 = vmul.f32 %v2280_v23, %v694_v0 }
 0xe70   :  { %698 = vrot.lane.b32.xlu1 %v696_v1, %s2440_s9 }
 0xee2   :  { %v699_v4 = vpop.permute.xlu1 %698 }
 0xee3   :  { %v701_v6 = vadd.f32 %v699_v4, %v691_v2 }
 0xee5   :  { %2281 = vtanh.f32 %v701_v6 }
 0xeef   :  { %v2282_v7 = vpop.eup %2281 }
 0xef0   :  { %704 = vrot.lane.b32.xlu0 %v2282_v7, %s2440_s9 }
 0xef4   :  { %171 = vperm.xlu0 %2233, %v1851_v8  }
 0xf62   :  { %v705_v9 = vpop.permute.xlu0 %704 }
 0xf63   :  { %v707_v10 = vmul.f32 %v2280_v23, %v705_v9 }
 0xf65   :  { %709 = vrot.lane.b32.xlu1 %v707_v10, %s2444_s1 }
 0xf73   :  { %v172_v12 = vpop.permute.xlu0 %171 }
 0xf74   :  { %v174_v13 = vmul.f32 %v2541_v3, %v172_v12  ;;  %v90_v12 = vld [vmem:[#allocation6 + $0x8] sm:$0xff] }
 0xf76   :  { %v175_v14 = vadd.f32 %v2546_v5, %v174_v13  ;;  %v91_v13 = vld [vmem:[#allocation6 + $0x10] sm:$0xff] }
 0xfd7   :  { %v710_v11 = vpop.permute.xlu1 %709 }
 0xfd8   :  { %2024 = vmatmul.mubr.msk.f32.vlgmr.msra.gmra.mrb[4].mxu1 %vm206_vm1, %v710_v11  ;;  %v89_v11 = vld [vmem:[#allocation6] sm:$0xff] }
 0xfd9   :  { %2045 = vmatprep.mubr.msk.f32.mxu1 %vm2442_vm0, %v2443_v22  ;;  %2169 = vmatpush3.bf16.msra.mxu1 %v2168_v54 }
 0xfda   :  { %2170 = vmatprep.subr.bf16.mxu1 %v2441_v19 }
 0xfdd   :  { %2172 = vmatpush3.bf16.msra.mxu1 %v2171_v56 }
 0xfde   :  { %2179 = vmatprep.subr.bf16.mxu1 %v2441_v19 }
0x10ab   :  { %v779_v15 = vpop.f32.mrb[4].mxu1 }
0x10ac   :  { %v783_v16 = vadd.f32 %v779_v15, %v175_v14  ;;  %v2025_v17 = vpop.f32.mrb[5].mxu1  ;;  %v2698_v14 = vpack.c.bf16 %v90_v12, %v89_v11  ;;  %v92_v15 = vld [vmem:[#allocation6 + $0x18] sm:$0xff] }
0x10ae   :  { %2283 = vtanh.f32 %v783_v16  ;;  %v1865_v21 = vmul.f32 -1.442695, %v783_v16  ;;  %v2701_v16 = vpack.c.bf16 %v92_v15, %v91_v13 }
0x10b0   :  { %2285 = vpow2.f32 %v1865_v21 }
0x10b8   :  { %v2284_v18 = vpop.eup %2283 }
0x10b9   :  { %793 = vrot.lane.b32.xlu1 %v2284_v18, %s2440_s9 }
0x10ba   :  { %v2286_v24 = vpop.eup %2285 }
0x10bb   :  { %v787_v25 = vadd.f32 1.0, %v2286_v24 }
0x10bd   :  { %2287 = vrcp.f32 %v787_v25  ;;  %v2725_v25 = vld [vmem:[%s2849_s7] ss:$0 sm:$0xff] }
0x10c7   :  { %v2288_v26 = vpop.eup %2287 }
0x10c8   :  { %v791_v29 = vmul.f32 %v2288_v26, %v701_v6 }
0x112b   :  { %v794_v27 = vpop.permute.xlu1 %793 }
0x112c   :  { %v796_v28 = vmul.f32 %v2288_v26, %v794_v27 }
0x112e   :  { %798 = vrot.lane.b32.xlu0 %v796_v28, %s2440_s9 }
0x11a0   :  { %v799_v30 = vpop.permute.xlu0 %798 }
0x11a1   :  { %v801_v31 = vadd.f32 %v799_v30, %v791_v29 }
0x11a3   :  { %2289 = vtanh.f32 %v801_v31 }
0x11ad   :  { %v2290_v32 = vpop.eup %2289 }
0x11ae   :  { %804 = vrot.lane.b32.xlu1 %v2290_v32, %s2440_s9 }
0x11b2   :  { %180 = vperm.xlu1 %2234, %v1852_v33  }
0x1220   :  { %v805_v34 = vpop.permute.xlu1 %804 }
0x1221   :  { %v807_v35 = vmul.f32 %v2288_v26, %v805_v34 }
0x1223   :  { %809 = vrot.lane.b32.xlu0 %v807_v35, %s2444_s1 }
0x1231   :  { %v181_v37 = vpop.permute.xlu1 %180 }
0x1232   :  { %v183_v38 = vmul.f32 %v2541_v3, %v181_v37 }
0x1234   :  { %v184_v39 = vadd.f32 %v2546_v5, %v183_v38 }
0x1295   :  { %v810_v36 = vpop.permute.xlu0 %809 }
0x1296   :  { %2035 = vmatmul.mubr.msk.f32.vlgmr.msra.gmra.mrb[6].mxu0 %vm206_vm1, %v810_v36 }
0x1297   :  { %2056 = vmatprep.mubr.msk.f32.mxu0 %vm2442_vm0, %v2443_v22  ;;  %2175 = vmatpush3.bf16.msra.mxu0 %v2698_v14 }
0x1298   :  { %2176 = vmatprep.subr.bf16.mxu0 %v2441_v19 }
0x129b   :  { %2178 = vmatpush3.bf16.msra.mxu0 %v2701_v16 }
0x129c   :  { %2185 = vmatprep.subr.bf16.mxu0 %v2441_v19 }
0x1369   :  { %v879_v40 = vpop.f32.mrb[6].mxu0 }
0x136a   :  { %v883_v41 = vadd.f32 %v879_v40, %v184_v39  ;;  %v2036_v42 = vpop.f32.mrb[7].mxu0 }
0x136c   :  { %2291 = vtanh.f32 %v883_v41  ;;  %v1867_v44 = vmul.f32 -1.442695, %v883_v41 }
0x136e   :  { %2293 = vpow2.f32 %v1867_v44 }
0x1376   :  { %v2292_v43 = vpop.eup %2291 }
0x1377   :  { %893 = vrot.lane.b32.xlu0 %v2292_v43, %s2440_s9 }
0x1378   :  { %v2294_v45 = vpop.eup %2293 }
0x1379   :  { %v887_v46 = vadd.f32 1.0, %v2294_v45 }
0x137b   :  { %2295 = vrcp.f32 %v887_v46 }
0x1385   :  { %v2296_v47 = vpop.eup %2295 }
0x1386   :  { %v891_v3 = vmul.f32 %v2296_v47, %v801_v31 }
0x13e9   :  { %v894_v48 = vpop.permute.xlu0 %893 }
0x13ea   :  { %v896_v49 = vmul.f32 %v2296_v47, %v894_v48 }
0x13ec   :  { %898 = vrot.lane.b32.xlu1 %v896_v49, %s2440_s9 }
0x145e   :  { %v899_v50 = vpop.permute.xlu1 %898 }
0x145f   :  { %v901_v5 = vadd.f32 %v899_v50, %v891_v3 }
0x1461   :  { %2297 = vtanh.f32 %v901_v5 }
0x146b   :  { %v2298_v57 = vpop.eup %2297 }
0x146c   :  { %904 = vrot.lane.b32.xlu0 %v2298_v57, %s2440_s9 }
0x14de   :  { %v905_v58 = vpop.permute.xlu0 %904 }
0x14df   :  { %v907_v59 = vmul.f32 %v2296_v47, %v905_v58 }
0x14e1   :  { %909 = vrot.lane.b32.xlu1 %v907_v59, %s2444_s1 }
0x1553   :  { %v910_v60 = vpop.permute.xlu1 %909 }
0x1554   :  { %2046 = vmatmul.mubr.msk.f32.vlgmr.msra.gmra.mrb[6].mxu1 %vm206_vm1, %v910_v60 }
0x1555   :  { %2067 = vmatprep.mubr.msk.f32.mxu1 %vm2442_vm0, %v2443_v22  ;;  %2181 = vmatpush3.bf16.msra.mxu1 %v2698_v14 }
0x1556   :  { %2182 = vmatprep.subr.bf16.mxu1 %v2441_v19 }
0x1559   :  { %2184 = vmatpush3.bf16.msra.mxu1 %v2701_v16 }
0x155a   :  { %2191 = vmatprep.subr.bf16.mxu1 %v2441_v19 }
0x1627   :  { %v979_v20 = vpop.f32.mrb[6].mxu1 }
0x1628   :  { %v980_v62 = vadd.f32 %v1842_v61, %v979_v20  ;;  %v2047_v63 = vpop.f32.mrb[7].mxu1 }
0x162a   :  { %2299 = vtanh.f32 %v980_v62  ;;  %v1869_v0 = vmul.f32 -1.442695, %v980_v62 }
0x162c   :  { %2301 = vpow2.f32 %v1869_v0 }
0x1634   :  { %v2300_v23 = vpop.eup %2299 }
0x1635   :  { %992 = vrot.lane.b32.xlu0 %v2300_v23, %s2440_s9 }
0x1636   :  { %v2302_v1 = vpop.eup %2301 }
0x1637   :  { %v986_v2 = vadd.f32 1.0, %v2302_v1 }
0x1639   :  { %2303 = vrcp.f32 %v986_v2 }
0x1643   :  { %v2304_v4 = vpop.eup %2303 }
0x1644   :  { %v990_v8 = vmul.f32 %v2304_v4, %v901_v5 }
0x16a7   :  { %v993_v6 = vpop.permute.xlu0 %992 }
0x16a8   :  { %v995_v7 = vmul.f32 %v2304_v4, %v993_v6 }
0x16aa   :  { %997 = vrot.lane.b32.xlu1 %v995_v7, %s2440_s9 }
0x171c   :  { %v998_v9 = vpop.permute.xlu1 %997 }
0x171d   :  { %v1000_v10 = vadd.f32 %v998_v9, %v990_v8 }
0x171f   :  { %2305 = vtanh.f32 %v1000_v10 }
0x1729   :  { %v2306_v17 = vpop.eup %2305 }
0x172a   :  { %1003 = vrot.lane.b32.xlu0 %v2306_v17, %s2440_s9 }
0x179c   :  { %v1004_v18 = vpop.permute.xlu0 %1003 }
0x179d   :  { %v2711_v21 = vmul.f32 %v2304_v4, %v1004_v18 }
0x179f   :  { %1008 = vrot.lane.b32.xlu1 %v2711_v21, %s2444_s1 }
0x1811   :  { %v1009_v24 = vpop.permute.xlu1 %1008 }
0x1812   :  { %2057 = vmatmul.mubr.msk.f32.vlgmr.msra.gmra.mrb[8].mxu0 %vm206_vm1, %v1009_v24 }
0x1813   :  { %2187 = vmatpush3.bf16.msra.mxu0 %v2698_v14  ;;  %2078 = vmatprep.mubr.msk.f32.mxu0 %vm2442_vm0, %v2443_v22 }
0x1814   :  { %2188 = vmatprep.subr.bf16.mxu0 %v2441_v19 }
0x1817   :  { %2190 = vmatpush3.bf16.msra.mxu0 %v2701_v16 }
0x1818   :  { %2197 = vmatprep.subr.bf16.mxu0 %v2441_v19 }
0x18e5   :  { %v1078_v26 = vpop.f32.mrb[8].mxu0 }
0x18e6   :  { %v1079_v27 = vadd.f32 %v2725_v25, %v1078_v26  ;;  %v2058_v28 = vpop.f32.mrb[9].mxu0 }
0x18e8   :  { %2307 = vtanh.f32 %v1079_v27  ;;  %v1871_v30 = vmul.f32 -1.442695, %v1079_v27 }
0x18ea   :  { %2309 = vpow2.f32 %v1871_v30 }
0x18f2   :  { %v2308_v29 = vpop.eup %2307 }
0x18f3   :  { %1091 = vrot.lane.b32.xlu0 %v2308_v29, %s2440_s9 }
0x18f4   :  { %v2310_v31 = vpop.eup %2309 }
0x18f5   :  { %v1085_v32 = vadd.f32 1.0, %v2310_v31 }
0x18f7   :  { %2311 = vrcp.f32 %v1085_v32 }
0x1901   :  { %v2312_v33 = vpop.eup %2311 }
0x1902   :  { %v1089_v36 = vmul.f32 %v2312_v33, %v1000_v10 }
0x1965   :  { %v1092_v34 = vpop.permute.xlu0 %1091 }
0x1966   :  { %v1094_v35 = vmul.f32 %v2312_v33, %v1092_v34 }
0x1968   :  { %1096 = vrot.lane.b32.xlu1 %v1094_v35, %s2440_s9 }
0x19da   :  { %v1097_v37 = vpop.permute.xlu1 %1096 }
0x19db   :  { %v1099_v38 = vadd.f32 %v1097_v37, %v1089_v36 }
0x19dd   :  { %2313 = vtanh.f32 %v1099_v38 }
0x19e7   :  { %v2314_v39 = vpop.eup %2313 }
0x19e8   :  { %1102 = vrot.lane.b32.xlu0 %v2314_v39, %s2440_s9 }
0x1a5a   :  { %v1103_v40 = vpop.permute.xlu0 %1102 }
0x1a5b   :  { %v2731_v41 = vmul.f32 %v2312_v33, %v1103_v40 }
0x1a5d   :  { %1107 = vrot.lane.b32.xlu1 %v2731_v41, %s2444_s1 }
0x1acf   :  { %v1108_v42 = vpop.permute.xlu1 %1107 }
0x1ad0   :  { %2068 = vmatmul.mubr.msk.f32.vlgmr.msra.gmra.mrb[8].mxu1 %vm206_vm1, %v1108_v42 }
0x1ad1   :  { %2193 = vmatpush3.bf16.msra.mxu1 %v2698_v14  ;;  %2089 = vmatprep.mubr.msk.f32.mxu1 %vm2442_vm0, %v2443_v22 }
0x1ad2   :  { %2194 = vmatprep.subr.bf16.mxu1 %v2441_v19 }
0x1ad5   :  { %2196 = vmatpush3.bf16.msra.mxu1 %v2701_v16 }
0x1ad6   :  { %2203 = vmatprep.subr.bf16.mxu1 %v2441_v19 }
0x1ba3   :  { %v1177_v43 = vpop.f32.mrb[8].mxu1 }
0x1ba4   :  { %v1178_v44 = vadd.f32 %v2725_v25, %v1177_v43  ;;  %v2069_v45 = vpop.f32.mrb[9].mxu1 }
0x1ba6   :  { %2315 = vtanh.f32 %v1178_v44  ;;  %v1873_v47 = vmul.f32 -1.442695, %v1178_v44 }
0x1ba8   :  { %2317 = vpow2.f32 %v1873_v47 }
0x1bb0   :  { %v2316_v46 = vpop.eup %2315 }
0x1bb1   :  { %1190 = vrot.lane.b32.xlu0 %v2316_v46, %s2440_s9 }
0x1bb2   :  { %v2318_v48 = vpop.eup %2317 }
0x1bb3   :  { %v1184_v49 = vadd.f32 1.0, %v2318_v48 }
0x1bb5   :  { %2319 = vrcp.f32 %v1184_v49 }
0x1bbf   :  { %v2320_v3 = vpop.eup %2319 }
0x1bc0   :  { %v1188_v51 = vmul.f32 %v2320_v3, %v1099_v38 }
0x1c23   :  { %v1191_v50 = vpop.permute.xlu0 %1190 }
0x1c24   :  { %v1193_v5 = vmul.f32 %v2320_v3, %v1191_v50 }
0x1c26   :  { %1195 = vrot.lane.b32.xlu1 %v1193_v5, %s2440_s9 }
0x1c98   :  { %v1196_v52 = vpop.permute.xlu1 %1195 }
0x1c99   :  { %v1198_v53 = vadd.f32 %v1196_v52, %v1188_v51 }
0x1c9b   :  { %2321 = vtanh.f32 %v1198_v53 }
0x1ca5   :  { %v2322_v54 = vpop.eup %2321 }
0x1ca6   :  { %1201 = vrot.lane.b32.xlu0 %v2322_v54, %s2440_s9 }
0x1d18   :  { %v1202_v55 = vpop.permute.xlu0 %1201 }
0x1d19   :  { %v2746_v56 = vmul.f32 %v2320_v3, %v1202_v55 }
0x1d1b   :  { %1206 = vrot.lane.b32.xlu1 %v2746_v56, %s2444_s1 }
0x1d8d   :  { %v1207_v57 = vpop.permute.xlu1 %1206 }
0x1d8e   :  { %2079 = vmatmul.mubr.msk.f32.vlgmr.msra.gmra.mrb[10].mxu0 %vm206_vm1, %v1207_v57 }
0x1d8f   :  { %2199 = vmatpush3.bf16.msra.mxu0 %v2698_v14  ;;  %2100 = vmatprep.mubr.msk.f32.mxu0 %vm2442_vm0, %v2443_v22 }
0x1d90   :  { %2200 = vmatprep.subr.bf16.mxu0 %v2441_v19 }
0x1d93   :  { %2202 = vmatpush3.bf16.msra.mxu0 %v2701_v16 }
0x1d94   :  { %2209 = vmatprep.subr.bf16.mxu0 %v2441_v19 }
0x1e61   :  { %v1276_v58 = vpop.f32.mrb[10].mxu0 }
0x1e62   :  { %v1277_v59 = vadd.f32 %v2725_v25, %v1276_v58  ;;  %v2080_v60 = vpop.f32.mrb[11].mxu0 }
0x1e64   :  { %2323 = vtanh.f32 %v1277_v59  ;;  %v1875_v20 = vmul.f32 -1.442695, %v1277_v59 }
0x1e66   :  { %2325 = vpow2.f32 %v1875_v20 }
0x1e6e   :  { %v2324_v61 = vpop.eup %2323 }
0x1e6f   :  { %1289 = vrot.lane.b32.xlu0 %v2324_v61, %s2440_s9 }
0x1e70   :  { %v2326_v62 = vpop.eup %2325 }
0x1e71   :  { %v1283_v63 = vadd.f32 1.0, %v2326_v62 }
0x1e73   :  { %2327 = vrcp.f32 %v1283_v63 }
0x1e7d   :  { %v2328_v23 = vpop.eup %2327 }
0x1e7e   :  { %v1287_v2 = vmul.f32 %v2328_v23, %v1198_v53 }
0x1ee1   :  { %v1290_v0 = vpop.permute.xlu0 %1289 }
0x1ee2   :  { %v1292_v1 = vmul.f32 %v2328_v23, %v1290_v0 }
0x1ee4   :  { %1294 = vrot.lane.b32.xlu1 %v1292_v1, %s2440_s9 }
0x1f56   :  { %v1295_v4 = vpop.permute.xlu1 %1294 }
0x1f57   :  { %v1297_v6 = vadd.f32 %v1295_v4, %v1287_v2 }
0x1f59   :  { %2329 = vtanh.f32 %v1297_v6 }
0x1f63   :  { %v2330_v7 = vpop.eup %2329 }
0x1f64   :  { %1300 = vrot.lane.b32.xlu0 %v2330_v7, %s2440_s9 }
0x1fd6   :  { %v1301_v8 = vpop.permute.xlu0 %1300 }
0x1fd7   :  { %v2761_v9 = vmul.f32 %v2328_v23, %v1301_v8 }
0x1fd9   :  { %1305 = vrot.lane.b32.xlu1 %v2761_v9, %s2444_s1 }
0x204b   :  { %v1306_v10 = vpop.permute.xlu1 %1305 }
0x204c   :  { %2090 = vmatmul.mubr.msk.f32.vlgmr.msra.gmra.mrb[10].mxu1 %vm206_vm1, %v1306_v10 }
0x204d   :  { %2205 = vmatpush3.bf16.msra.mxu1 %v2698_v14  ;;  %2111 = vmatprep.mubr.msk.f32.mxu1 %vm2442_vm0, %v2443_v22 }
0x204e   :  { %2206 = vmatprep.subr.bf16.mxu1 %v2441_v19 }
0x2051   :  { %2208 = vmatpush3.bf16.msra.mxu1 %v2701_v16 }
0x211f   :  { %v1375_v11 = vpop.f32.mrb[10].mxu1 }
0x2120   :  { %v1376_v12 = vadd.f32 %v2725_v25, %v1375_v11  ;;  %v2091_v13 = vpop.f32.mrb[11].mxu1 }
0x2122   :  { %2331 = vtanh.f32 %v1376_v12  ;;  %v1877_v17 = vmul.f32 -1.442695, %v1376_v12 }
0x2124   :  { %2333 = vpow2.f32 %v1877_v17 }
0x212c   :  { %v2332_v15 = vpop.eup %2331 }
0x212d   :  { %1388 = vrot.lane.b32.xlu0 %v2332_v15, %s2440_s9 }
0x212e   :  { %v2334_v18 = vpop.eup %2333 }
0x212f   :  { %v1382_v24 = vadd.f32 1.0, %v2334_v18 }
0x2131   :  { %2335 = vrcp.f32 %v1382_v24 }
0x213b   :  { %v2336_v26 = vpop.eup %2335 }
0x213c   :  { %v1386_v29 = vmul.f32 %v2336_v26, %v1297_v6  ;;  %v1884_v6 = vld [vmem:[%s2850_s8] ss:$0 sm:$0xff]  ;;  %s2445_s8 = smov 1  }
0x219f   :  { %v1389_v27 = vpop.permute.xlu0 %1388 }
0x21a0   :  { %v1391_v28 = vmul.f32 %v2336_v26, %v1389_v27 }
0x21a2   :  { %1393 = vrot.lane.b32.xlu1 %v1391_v28, %s2440_s9 }
0x2214   :  { %v1394_v30 = vpop.permute.xlu1 %1393 }
0x2215   :  { %v1396_v31 = vadd.f32 %v1394_v30, %v1386_v29 }
0x2217   :  { %2337 = vtanh.f32 %v1396_v31 }
0x2221   :  { %v2338_v32 = vpop.eup %2337 }
0x2222   :  { %1399 = vrot.lane.b32.xlu0 %v2338_v32, %s2440_s9 }
0x2294   :  { %v1400_v33 = vpop.permute.xlu0 %1399 }
0x2295   :  { %v2775_v34 = vmul.f32 %v2336_v26, %v1400_v33 }
0x2297   :  { %1404 = vrot.lane.b32.xlu1 %v2775_v34, %s2444_s1 }
0x2309   :  { %v1405_v35 = vpop.permute.xlu1 %1404 }
0x230a   :  { %2101 = vmatmul.mubr.msk.f32.vlgmr.msra.gmra.mrb[12].mxu0 %vm206_vm1, %v1405_v35 }
0x230b   :  { %2211 = vmatpush3.bf16.msra.mxu0 %v2698_v14  ;;  %2122 = vmatprep.mubr.msk.f32.mxu0 %vm2442_vm0, %v2443_v22 }
0x230c   :  { %2212 = vmatprep.subr.bf16.mxu0 %v2441_v19 }
0x230f   :  { %2214 = vmatpush3.bf16.msra.mxu0 %v2701_v16 }
0x23dd   :  { %v1474_v36 = vpop.f32.mrb[12].mxu0 }
0x23de   :  { %v1475_v37 = vadd.f32 %v2725_v25, %v1474_v36  ;;  %v2102_v38 = vpop.f32.mrb[13].mxu0 }
0x23e0   :  { %2339 = vtanh.f32 %v1475_v37  ;;  %v1879_v40 = vmul.f32 -1.442695, %v1475_v37 }
0x23e2   :  { %2341 = vpow2.f32 %v1879_v40 }
0x23ea   :  { %v2340_v39 = vpop.eup %2339 }
0x23eb   :  { %1487 = vrot.lane.b32.xlu0 %v2340_v39, %s2440_s9 }
0x23ec   :  { %v2342_v42 = vpop.eup %2341 }
0x23ed   :  { %v1481_v43 = vadd.f32 1.0, %v2342_v42 }
0x23ef   :  { %2343 = vrcp.f32 %v1481_v43 }
0x23f9   :  { %v2344_v14 = vpop.eup %2343 }
0x23fa   :  { %v1485_v19 = vmul.f32 %v2344_v14, %v1396_v31 }
0x245d   :  { %v1488_v44 = vpop.permute.xlu0 %1487 }
0x245e   :  { %v1490_v22 = vmul.f32 %v2344_v14, %v1488_v44 }
0x2460   :  { %1492 = vrot.lane.b32.xlu1 %v1490_v22, %s2440_s9 }
0x24d2   :  { %v1493_v16 = vpop.permute.xlu1 %1492 }
0x24d3   :  { %v1495_v45 = vadd.f32 %v1493_v16, %v1485_v19 }
0x24d5   :  { %2345 = vtanh.f32 %v1495_v45 }
0x24df   :  { %v2346_v46 = vpop.eup %2345 }
0x24e0   :  { %1498 = vrot.lane.b32.xlu0 %v2346_v46, %s2440_s9 }
0x2552   :  { %v1499_v47 = vpop.permute.xlu0 %1498 }
0x2553   :  { %v2789_v48 = vmul.f32 %v2344_v14, %v1499_v47 }
0x2555   :  { %1503 = vrot.lane.b32.xlu1 %v2789_v48, %s2444_s1 }
0x25c7   :  { %v1504_v49 = vpop.permute.xlu1 %1503 }
0x25c8   :  { %2112 = vmatmul.mubr.msk.f32.vlgmr.msra.gmra.mrb[12].mxu1 %vm206_vm1, %v1504_v49 }
0x269b   :  { %v1573_v3 = vpop.f32.mrb[12].mxu1 }
0x269c   :  { %v1574_v50 = vadd.f32 %v2725_v25, %v1573_v3  ;;  %v2113_v5 = vpop.f32.mrb[13].mxu1 }
0x269e   :  { %2347 = vtanh.f32 %v1574_v50  ;;  %v1881_v52 = vmul.f32 -1.442695, %v1574_v50 }
0x26a0   :  { %2349 = vpow2.f32 %v1881_v52 }
0x26a8   :  { %v2348_v51 = vpop.eup %2347 }
0x26a9   :  { %1586 = vrot.lane.b32.xlu0 %v2348_v51, %s2440_s9 }
0x26aa   :  { %v2350_v53 = vpop.eup %2349 }
0x26ab   :  { %v1580_v54 = vadd.f32 1.0, %v2350_v53 }
0x26ad   :  { %2351 = vrcp.f32 %v1580_v54 }
0x26b7   :  { %v2352_v55 = vpop.eup %2351 }
0x26b8   :  { %v1584_v59 = vmul.f32 %v2352_v55, %v1495_v45 }
0x271b   :  { %v1587_v57 = vpop.permute.xlu0 %1586 }
0x271c   :  { %v1589_v58 = vmul.f32 %v2352_v55, %v1587_v57 }
0x271e   :  { %1591 = vrot.lane.b32.xlu1 %v1589_v58, %s2440_s9 }
0x2790   :  { %v1592_v60 = vpop.permute.xlu1 %1591 }
0x2791   :  { %v1594_v61 = vadd.f32 %v1592_v60, %v1584_v59 }
0x2793   :  { %2353 = vtanh.f32 %v1594_v61 }
0x279d   :  { %v2354_v20 = vpop.eup %2353 }
0x279e   :  { %1597 = vrot.lane.b32.xlu0 %v2354_v20, %s2440_s9 }
0x2810   :  { %v1598_v62 = vpop.permute.xlu0 %1597 }
0x2811   :  { %v1600_v63 = vmul.f32 %v2352_v55, %v1598_v62 }
0x2813   :  { %1602 = vrot.lane.b32.xlu1 %v1600_v63, %s2444_s1 }
0x2885   :  { %v1603_v23 = vpop.permute.xlu1 %1602 }
0x2886   :  { %2123 = vmatmul.mubr.msk.f32.vlgmr.msra.gmra.mrb[14].mxu0 %vm206_vm1, %v1603_v23 }
0x2959   :  { %v1672_v0 = vpop.f32.mrb[14].mxu0 }
0x295a   :  { %v1673_v1 = vadd.f32 %v2725_v25, %v1672_v0  ;;  %v2124_v2 = vpop.f32.mrb[15].mxu0 }
0x295c   :  { %2355 = vtanh.f32 %v1673_v1  ;;  %v1883_v7 = vmul.f32 -1.442695, %v1673_v1 }
0x295e   :  { %2357 = vpow2.f32 %v1883_v7 }
0x2966   :  { %v2356_v4 = vpop.eup %2355 }
0x2967   :  { %1685 = vrot.lane.b32.xlu0 %v2356_v4, %s2440_s9 }
0x2968   :  { %v2358_v8 = vpop.eup %2357 }
0x2969   :  { %v1679_v10 = vadd.f32 1.0, %v2358_v8 }
0x296b   :  { %1705 = vrot.lane.b32.xlu0 %v1884_v6, %s2444_s1  ;;  %2359 = vrcp.f32 %v1679_v10 }
0x2975   :  { %v2360_v11 = vpop.eup %2359 }
0x2976   :  { %v1683_v18 = vmul.f32 %v2360_v11, %v1594_v61 }
0x29d9   :  { %v1686_v12 = vpop.permute.xlu0 %1685 }
0x29da   :  { %v1688_v13 = vmul.f32 %v2360_v11, %v1686_v12 }
0x29dc   :  { %1690 = vrot.lane.b32.xlu1 %v1688_v13, %s2440_s9 }
0x29dd   :  { %v1706_v25 = vpop.permute.xlu0 %1705 }
0x29de   :  { %v1708_v15 = vmul.f32 %v1706_v25, %v2711_v21  ;;  %v1718_v17 = vmul.f32 %v1706_v25, %v2731_v41  ;;  %v1736_v21 = vmul.f32 %v1706_v25, %v2761_v9  ;;  %v1763_v41 = vmul.f32 %v1706_v25, %v1600_v63 }
0x29df   :  { %v1727_v32 = vmul.f32 %v1706_v25, %v2746_v56  ;;  %v1745_v33 = vmul.f32 %v1706_v25, %v2775_v34  ;;  %v1754_v35 = vmul.f32 %v1706_v25, %v2789_v48  ;;  %v1844_v34 = vld [vmem:[#allocation2] ss:$0 sm:$0xff] }
0x29e0   :  { %1710 = vrot.lane.b32.xlu0 %v1708_v15, %s2444_s1 }
0x29e4   :  { %1720 = vrot.lane.b32.xlu0 %v1718_v17, %s2444_s1 }
0x2a4e   :  { %v1691_v24 = vpop.permute.xlu1 %1690 }
0x2a4f   :  { %v1693_v26 = vadd.f32 %v1691_v24, %v1683_v18 }
0x2a51   :  { %2361 = vtanh.f32 %v1693_v26 }
0x2a52   :  { %v1711_v27 = vpop.permute.xlu0 %1710 }
0x2a53   :  { %v1714_v31 = vsel %vm1713_vm2, %v1711_v27, 0.0 }
0x2a56   :  { %v1721_v28 = vpop.permute.xlu0 %1720 }
0x2a57   :  { %v1723_v29 = vsel %vm1713_vm2, %v1721_v28, 0.0 }
0x2a58   :  { %1724 = vadd.xlane.f32.xlu0 %v1723_v29 }
0x2a5b   :  { %v2362_v30 = vpop.eup %2361 }
0x2a5c   :  { %1696 = vrot.lane.b32.xlu1 %v2362_v30, %s2440_s9  ;;  %s2446_s9 = smov 3  }
0x2a6e   :  { %1738 = vrot.lane.b32.xlu0 %v1736_v21, %s2444_s1 }
0x2a72   :  { %1765 = vrot.lane.b32.xlu0 %v1763_v41, %s2444_s1 }
0x2a80   :  { %1715 = vadd.xlane.f32.xlu1 %v1714_v31 }
0x2a91   :  { %1729 = vrot.lane.b32.xlu1 %v1727_v32, %s2444_s1 }
0x2a95   :  { %1747 = vrot.lane.b32.xlu1 %v1745_v33, %s2444_s1 }
0x2a99   :  { %1756 = vrot.lane.b32.xlu1 %v1754_v35, %s2444_s1 }
0x2ace   :  { %v1697_v9 = vpop.permute.xlu1 %1696 }
0x2acf   :  { %v1699_v36 = vmul.f32 %v2360_v11, %v1697_v9 }
0x2ad1   :  { %v1772_v37 = vmul.f32 %v1706_v25, %v1699_v36 }
0x2ad3   :  { %1774 = vrot.lane.b32.xlu1 %v1772_v37, %s2444_s1  ;;  %s2448_s1 = smov 4  }
0x2ae5   :  { %v1725_v38 = vpop.xlane.xlu0 %1724 }
0x2ae6   :  { %v1726_v43 = vadd.f32 %v1844_v34, %v1725_v38 }
0x2ae9   :  { %v1739_v39 = vpop.permute.xlu0 %1738 }
0x2aea   :  { %v1741_v40 = vsel %vm1713_vm2, %v1739_v39, 0.0 }
0x2aed   :  { %v1766_v56 = vpop.permute.xlu0 %1765 }
0x2aee   :  { %v1768_v42 = vsel %vm1713_vm2, %v1766_v56, 0.0 }
0x2af7   :  { %1742 = vadd.xlane.f32.xlu1 %v1741_v40 }
0x2afb   :  { %1769 = vadd.xlane.f32.xlu1 %v1768_v42 }
0x2b0c   :  { %1782 = vrot.lane.b32.xlu1 %v1726_v43, %s2445_s8 }
0x2b0d   :  { %v1716_v14 = vpop.xlane.xlu1 %1715 }
0x2b0e   :  { %v1717_v20 = vadd.f32 %v1844_v34, %v1716_v14 }
0x2b11   :  { %v1730_v44 = vpop.permute.xlu1 %1729 }
0x2b12   :  { %v1732_v22 = vsel %vm1713_vm2, %v1730_v44, 0.0 }
0x2b13   :  { %1733 = vadd.xlane.f32.xlu0 %v1732_v22 }
0x2b15   :  { %v1748_v19 = vpop.permute.xlu1 %1747 }
0x2b16   :  { %v1750_v16 = vsel %vm1713_vm2, %v1748_v19, 0.0 }
0x2b17   :  { %1751 = vadd.xlane.f32.xlu0 %v1750_v16 }
0x2b19   :  { %v1757_v45 = vpop.permute.xlu1 %1756 }
0x2b1a   :  { %v1759_v46 = vsel %vm1713_vm2, %v1757_v45, 0.0 }
0x2b1b   :  { %1760 = vadd.xlane.f32.xlu0 %v1759_v46 }
0x2b45   :  { %v1775_v47 = vpop.permute.xlu1 %1774 }
0x2b46   :  { %v1777_v48 = vsel %vm1713_vm2, %v1775_v47, 0.0 }
0x2b47   :  { %1778 = vadd.xlane.f32.xlu0 %v1777_v48 }
0x2b84   :  { %v1743_v49 = vpop.xlane.xlu1 %1742 }
0x2b85   :  { %v1744_v3 = vadd.f32 %v1844_v34, %v1743_v49 }
0x2b87   :  { %1790 = vrot.lane.b32.xlu1 %v1744_v3, %s2446_s9 }
0x2b88   :  { %v1770_v53 = vpop.xlane.xlu1 %1769 }
0x2b89   :  { %v1771_v55 = vadd.f32 %v1844_v34, %v1770_v53 }
0x2b8c   :  { %v1783_v60 = vpop.permute.xlu1 %1782 }
0x2b8d   :  { %v1810_v63 = vsel %vm1809_vm3, %v1717_v20, %v1783_v60 }
0x2ba0   :  { %v1734_v50 = vpop.xlane.xlu0 %1733 }
0x2ba1   :  { %v1735_v5 = vadd.f32 %v1844_v34, %v1734_v50 }
0x2ba3   :  { %1786 = vrot.lane.b32.xlu0 %v1735_v5, %s2447_s25 }
0x2ba4   :  { %v1752_v51 = vpop.xlane.xlu0 %1751 }
0x2ba5   :  { %v1753_v52 = vadd.f32 %v1844_v34, %v1752_v51 }
0x2ba7   :  { %1794 = vrot.lane.b32.xlu1 %v1753_v52, %s2448_s1 }
0x2ba8   :  { %v1761_v54 = vpop.xlane.xlu0 %1760 }
0x2ba9   :  { %v1762_v57 = vadd.f32 %v1844_v34, %v1761_v54 }
0x2bab   :  { %1798 = vrot.lane.b32.xlu0 %v1762_v57, %s2449_s3  ;;  %1802 = vrot.lane.b32.xlu1 %v1771_v55, %s2450_s26 }
0x2bd4   :  { %v1779_v58 = vpop.xlane.xlu0 %1778 }
0x2bd5   :  { %v1780_v59 = vadd.f32 %v1844_v34, %v1779_v58 }
0x2bd7   :  { %1806 = vrot.lane.b32.xlu0 %v1780_v59, %s2451_s27 }
0x2bf9   :  { %v1791_v61 = vpop.permute.xlu1 %1790 }
0x2c15   :  { %v1787_v62 = vpop.permute.xlu0 %1786 }
0x2c16   :  { %v1812_v0 = vsel %vm1811_vm4, %v1810_v63, %v1787_v62 }
0x2c17   :  { %v1814_v2 = vsel %vm1813_vm5, %v1812_v0, %v1791_v61 }
0x2c19   :  { %v1795_v23 = vpop.permute.xlu1 %1794 }
0x2c1a   :  { %v1816_v4 = vsel %vm1815_vm6, %v1814_v2, %v1795_v23 }
0x2c1d   :  { %v1799_v1 = vpop.permute.xlu0 %1798  ;;  %v1803_v7 = vpop.permute.xlu1 %1802 }
0x2c1e   :  { %v1818_v6 = vsel %vm1817_vm7, %v1816_v4, %v1799_v1 }
0x2c1f   :  { %v1820_v8 = vsel %vm1819_vm8, %v1818_v6, %v1803_v7 }
0x2c49   :  { %v1807_v10 = vpop.permute.xlu0 %1806 }
0x2c4a   :  { %v1822_v11 = vsel %vm1821_vm9, %v1820_v8, %v1807_v10 }
0x2c4b   :  { %1824 = vst.msk [vmem:[#allocation8] sm:$0x3] %vm1823_vm10, %v1822_v11 }
0x2c4c   :  { %2418 = shalt.err (!%p2415_p6)
}
0x2c4d   :  { %s2419_s13 = scalar_lea.hbm %s2852_s10, 32 }
0x2c4e   :  { %p2420_p7 = scmp.ne.s32.totalorder %s2852_s10, %s2419_s13  ;;  %p2423_p8 = scmp.lt.u32.totalorder %s2419_s13, %s2852_s10 }
0x2c50   :  { %p2425_p9 = pnand %p2423_p8, %p2420_p7 }
0x2c52   :  { %2428 = shalt.err (!%p2425_p9)
}
0x2c53   :  { %1834 = dma.vmem_to_hbm [thread:$0]  %s1832_s29, 32, %s2852_s10, [#allocation5]  }
0x2c54   :  { %2433 = dma.done.wait [#allocation5], 32  }
0x2c55   :  { %2434 = vsyncadd [#allocation5], 4294967264 }
0x2c56   :  { %1838 = vsyncpa [#allocation4], 1 }
0x2c57   :  { %1839 = vsyncpa [#allocation7], 1 }
0x2c58   :  { %1840 = vsyncpa [#allocation5], 1 }

</bundles_post_ra>
